<compile_context>
chip_gen: v7x
topology: tpu7x:2x2x1
jax: 0.10.0
libtpu: 0.0.40
codegen_flags: <defaults>
</compile_context>

<pallas_src>
import numpy as np

import jax
import jax.numpy as jnp
from jax.experimental import pallas as pl
from jax.experimental.pallas import tpu as pltpu

EPS = 1e-5
NUM_USERS = 16
NUM_MOVIES = 16
NUM_NODES = NUM_USERS + NUM_MOVIES
EMBED_DIM = 128
NUM_LAYERS = 3
NUM_PAIRS = 8  # number of (user, movie) query pairs

_VMEM_SPEC = pl.BlockSpec(memory_space=pltpu.MemorySpace.VMEM)


# ----------------------------------------------------------------------------
# Fused forward kernel
# ----------------------------------------------------------------------------
def fused_forward_kernel(
    # scalar-prefetch args (SMEM, int32)
    u_idx_ref, m_idx_ref,
    # tensor inputs (VMEM)
    user_emb_ref, movie_emb_ref, gamma_ref, beta_ref, adj_ref,
    wcat_ref, bias_ref,
    w1_ref, b1_ref, w2_ref, b2_ref, w3_ref, b3_ref,
    # output
    o_ref,
    # scratch
    h_scratch,
):
    gamma = gamma_ref[...]
    beta = beta_ref[...]

    def batchnorm(x, n_rows):
        # Training-mode BatchNorm1d (batch statistics), single pass over the data
        # (sum + sum-of-squares -> biased variance, like PyTorch BN).
        x = x.astype(jnp.float32)
        inv_n = 1.0 / float(n_rows)
        mean = jnp.sum(x, axis=0, keepdims=True) * inv_n
        ex2 = jnp.sum(x * x, axis=0, keepdims=True) * inv_n
        var = ex2 - mean * mean
        return (x - mean) * jax.lax.rsqrt(var + EPS) * gamma + beta

    # Per-table statistics, shared gamma/beta (one nn.BatchNorm1d module).
    user_h = batchnorm(user_emb_ref[...], NUM_USERS)
    movie_h = batchnorm(movie_emb_ref[...], NUM_MOVIES)
    h0 = jnp.concatenate([user_h, movie_h], axis=0)            # (N, D)

    adj = adj_ref[...].astype(jnp.float32)
    h = h0
    for l in range(NUM_LAYERS):                                # static unroll (L=3)
        neigh = jnp.dot(adj, h, preferred_element_type=jnp.float32)   # mean aggregation
        hcat = jnp.concatenate([h, neigh], axis=1)                    # (N, 2D)
        # Merged fc_self + fc_neigh: one K=2D matmul on the MXU instead of two K=D.
        # (For larger N/D, cast hcat/wcat to bf16 here for ~2x MXU throughput; at
        #  N=32 the kernel is launch-bound so we keep full f32 for exactness.)
        h_new = jnp.dot(hcat, wcat_ref[l], preferred_element_type=jnp.float32) + bias_ref[l]
        h_new = jnp.maximum(h_new, 0.0)                        # SAGEConv activation=F.relu
        h = jnp.maximum(h_new + h0, 0.0)                       # residual with initial_h, relu

    # Stage final node features in VMEM so we can row-gather with dynamic indices.
    h_scratch[...] = h

    u_rows = [h_scratch[pl.ds(u_idx_ref[e], 1), :] for e in range(NUM_PAIRS)]
    m_rows = [h_scratch[pl.ds(m_idx_ref[e] + NUM_USERS, 1), :] for e in range(NUM_PAIRS)]
    x = jnp.concatenate(
        [jnp.concatenate(u_rows, axis=0), jnp.concatenate(m_rows, axis=0)], axis=1
    )                                                          # (E, 2D)

    # Predictor MLP head. Dropout(0.2) is identity in eval mode.
    h1 = jnp.maximum(
        jnp.dot(x, w1_ref[...], preferred_element_type=jnp.float32) + b1_ref[...], 0.0)
    h2 = jnp.maximum(
        jnp.dot(h1, w2_ref[...], preferred_element_type=jnp.float32) + b2_ref[...], 0.0)
    out = jnp.dot(h2, w3_ref[...], preferred_element_type=jnp.float32) + b3_ref[...]
    # NOTE: (E, 1) output is fine at E=8; if E grows into the hundreds, emit the
    # scores lane-dense (e.g. (1, E) padded toward 128) to avoid masked stores.
    o_ref[...] = out.astype(o_ref.dtype)


def forward(params, adj, user_indices, movie_indices):
    E, D, N = NUM_PAIRS, EMBED_DIM, NUM_NODES
    tensor_inputs = (
        params["user_emb"], params["movie_emb"], params["bn_gamma"], params["bn_beta"],
        adj, params["w_cat"], params["sage_bias"],
        params["pred1"][0], params["pred1"][1],
        params["pred2"][0], params["pred2"][1],
        params["pred3"][0], params["pred3"][1],
    )
    flops = (
        NUM_LAYERS * (2 * N * N * D + 2 * N * (2 * D) * D)            # aggregation + merged linear
        + 2 * E * (2 * D) * D + 2 * E * D * (D // 2) + 2 * E * (D // 2)  # predictor MLP
        + 12 * N * D                                                   # BN / residual / relu (approx)
    )
    bytes_accessed = int(
        sum(int(np.prod(a.shape)) * a.dtype.itemsize for a in tensor_inputs)
        + 2 * E * 4 + E * 4
    )

    pred = pl.pallas_call(
        fused_forward_kernel,
        out_shape=jax.ShapeDtypeStruct((E, 1), jnp.float32),
        grid_spec=pltpu.PrefetchScalarGridSpec(
            num_scalar_prefetch=2,            # user_indices, movie_indices -> SMEM
            grid=(),                          # whole problem fits in VMEM; no grid loop
            in_specs=[_VMEM_SPEC] * len(tensor_inputs),
            out_specs=_VMEM_SPEC,
            scratch_shapes=[pltpu.VMEM((N, D), jnp.float32)],
        ),
        cost_estimate=pl.CostEstimate(
            flops=flops, transcendentals=2 * D, bytes_accessed=bytes_accessed),
    )(user_indices, movie_indices, *tensor_inputs)
    return jnp.squeeze(pred, axis=-1)                                  # (E,)


# ----------------------------------------------------------------------------
# Parameter construction (deterministic, PyTorch-style inits)
# ----------------------------------------------------------------------------
def xavier_uniform(key, shape):
    fan_in, fan_out = shape
    bound = float(np.sqrt(6.0 / (fan_in + fan_out)))
    return jax.random.uniform(key, shape, jnp.float32, -bound, bound)


def linear_params(key, in_f, out_f):
    # PyTorch nn.Linear default init; weight stored transposed as [in_f, out_f].
    kw, kb = jax.random.split(key)
    bound = float(1.0 / np.sqrt(in_f))
    w = jax.random.uniform(kw, (in_f, out_f), jnp.float32, -bound, bound)
    b = jax.random.uniform(kb, (1, out_f), jnp.float32, -bound, bound)
    return w, b


def build_params(key):
    keys = jax.random.split(key, 16)
    p = {}
    p["user_emb"] = xavier_uniform(keys[0], (NUM_USERS, EMBED_DIM))
    p["movie_emb"] = xavier_uniform(keys[1], (NUM_MOVIES, EMBED_DIM))
    p["bn_gamma"] = jnp.ones((1, EMBED_DIM), jnp.float32)
    p["bn_beta"] = jnp.zeros((1, EMBED_DIM), jnp.float32)

    w_self, w_neigh, bias = [], [], []
    for l in range(NUM_LAYERS):
        ws, _ = linear_params(keys[2 + 2 * l], EMBED_DIM, EMBED_DIM)   # fc_self
        wn, _ = linear_params(keys[3 + 2 * l], EMBED_DIM, EMBED_DIM)   # fc_neigh
        w_self.append(ws)
        w_neigh.append(wn)
        bias.append(jnp.zeros((1, EMBED_DIM), jnp.float32))            # SAGEConv bias init 0
    p["w_self"] = jnp.stack(w_self)                                    # (L, D, D)   (reference)
    p["w_neigh"] = jnp.stack(w_neigh)                                  # (L, D, D)   (reference)
    # Merged per-layer weight for the kernel: (L, 2D, D).
    p["w_cat"] = jnp.concatenate([p["w_self"], p["w_neigh"]], axis=1)
    p["sage_bias"] = jnp.stack(bias)                                   # (L, 1, D)

    p["pred1"] = linear_params(keys[10], 2 * EMBED_DIM, EMBED_DIM)
    p["pred2"] = linear_params(keys[11], EMBED_DIM, EMBED_DIM // 2)
    p["pred3"] = linear_params(keys[12], EMBED_DIM // 2, 1)
    return p


def build_graph():
    # Deterministic bipartite user<->movie graph; mean aggregation == A_hat @ h.
    # (DGL graph object has no Pallas equivalent; dense normalized adjacency instead.)
    n = NUM_NODES
    adj = np.zeros((n, n), np.float32)
    for u in range(NUM_USERS):
        for k in range(3):
            m = (u * 3 + k) % NUM_MOVIES
            adj[u, NUM_USERS + m] = 1.0  # movie -> user message
            adj[NUM_USERS + m, u] = 1.0  # user -> movie message
    deg = adj.sum(axis=1, keepdims=True)
    a_hat = np.where(deg > 0, adj / np.maximum(deg, 1.0), 0.0).astype(np.float32)
    return jnp.asarray(a_hat)


# ----------------------------------------------------------------------------
# Pure-JAX reference (same math, no Pallas, un-merged weights) for correctness
# ----------------------------------------------------------------------------
def forward_ref(params, adj, user_indices, movie_indices):
    def bn(x):
        mean = jnp.mean(x, axis=0, keepdims=True)
        var = jnp.mean((x - mean) ** 2, axis=0, keepdims=True)
        return (x - mean) * jax.lax.rsqrt(var + EPS) * params["bn_gamma"] + params["bn_beta"]

    h0 = jnp.concatenate([bn(params["user_emb"]), bn(params["movie_emb"])], axis=0)
    h = h0
    for l in range(NUM_LAYERS):
        neigh = adj @ h
        h_new = jax.nn.relu(h @ params["w_self"][l] + neigh @ params["w_neigh"][l]
                            + params["sage_bias"][l])
        h = jax.nn.relu(h_new + h0)
    u = h[user_indices]
    m = h[movie_indices + NUM_USERS]
    x = jnp.concatenate([u, m], axis=1)
    (w1, b1), (w2, b2), (w3, b3) = params["pred1"], params["pred2"], params["pred3"]
    x = jax.nn.relu(x @ w1 + b1)
    x = jax.nn.relu(x @ w2 + b2)
    return jnp.squeeze(x @ w3 + b3, axis=-1)


if __name__ == "__main__":
    key = jax.random.PRNGKey(0)
    kp, ku, km = jax.random.split(key, 3)
    params = build_params(kp)
    adj = build_graph()
    user_indices = jax.random.randint(ku, (NUM_PAIRS,), 0, NUM_USERS, dtype=jnp.int32)
    movie_indices = jax.random.randint(km, (NUM_PAIRS,), 0, NUM_MOVIES, dtype=jnp.int32)

    out = forward(params, adj, user_indices, movie_indices)
    out = jax.block_until_ready(out)

    ref = jax.block_until_ready(forward_ref(params, adj, user_indices, movie_indices))
    np.testing.assert_allclose(np.asarray(out), np.asarray(ref), rtol=1e-3, atol=1e-3)

    assert out.shape == (NUM_PAIRS,)
    print("KERNEL_OK")
</pallas_src>

<mosaic_0001>
module attributes {stable_mosaic.version = 11 : i64} {
  func.func @fused_forward_kernel(%arg0: memref<8xi32, #tpu.memory_space<smem>>, %arg1: memref<8xi32, #tpu.memory_space<smem>>, %arg2: memref<16x128xf32, #tpu.memory_space<vmem>>, %arg3: memref<16x128xf32, #tpu.memory_space<vmem>>, %arg4: memref<1x128xf32, #tpu.memory_space<vmem>>, %arg5: memref<1x128xf32, #tpu.memory_space<vmem>>, %arg6: memref<32x32xf32, #tpu.memory_space<vmem>>, %arg7: memref<3x256x128xf32, #tpu.memory_space<vmem>>, %arg8: memref<3x1x128xf32, #tpu.memory_space<vmem>>, %arg9: memref<256x128xf32, #tpu.memory_space<vmem>>, %arg10: memref<1x128xf32, #tpu.memory_space<vmem>>, %arg11: memref<128x64xf32, #tpu.memory_space<vmem>>, %arg12: memref<1x64xf32, #tpu.memory_space<vmem>>, %arg13: memref<64x1xf32, #tpu.memory_space<vmem>>, %arg14: memref<1x1xf32, #tpu.memory_space<vmem>>, %arg15: memref<8x1xf32, #tpu.memory_space<vmem>>, %arg16: memref<32x128xf32, #tpu.memory_space<vmem>>) attributes {dimension_semantics = [], scalar_prefetch = 2 : i64, scratch_operands = 1 : i64, tpu.core_type = #tpu.core_type<tc>} {
    %c0 = arith.constant 0 : index
    %c0_0 = arith.constant 0 : index
    %0 = vector.load %arg4[%c0, %c0_0] : memref<1x128xf32, #tpu.memory_space<vmem>>, vector<1x128xf32>
    %c0_1 = arith.constant 0 : index
    %c0_2 = arith.constant 0 : index
    %1 = vector.load %arg5[%c0_1, %c0_2] : memref<1x128xf32, #tpu.memory_space<vmem>>, vector<1x128xf32>
    %c0_3 = arith.constant 0 : index
    %c0_4 = arith.constant 0 : index
    %2 = vector.load %arg2[%c0_3, %c0_4] : memref<16x128xf32, #tpu.memory_space<vmem>>, vector<16x128xf32>
    %cst = arith.constant dense<0.000000e+00> : vector<128xf32>
    %3 = vector.multi_reduction <add>, %2, %cst [0] : vector<16x128xf32> to vector<128xf32>
    %4 = vector.shape_cast %3 : vector<128xf32> to vector<1x128xf32>
    %cst_5 = arith.constant 6.250000e-02 : f32
    %5 = vector.broadcast %cst_5 : f32 to vector<1x128xf32>
    %6 = arith.mulf %4, %5 : vector<1x128xf32>
    %7 = arith.mulf %2, %2 : vector<16x128xf32>
    %cst_6 = arith.constant dense<0.000000e+00> : vector<128xf32>
    %8 = vector.multi_reduction <add>, %7, %cst_6 [0] : vector<16x128xf32> to vector<128xf32>
    %9 = vector.shape_cast %8 : vector<128xf32> to vector<1x128xf32>
    %cst_7 = arith.constant 6.250000e-02 : f32
    %10 = vector.broadcast %cst_7 : f32 to vector<1x128xf32>
    %11 = arith.mulf %9, %10 : vector<1x128xf32>
    %12 = arith.mulf %6, %6 : vector<1x128xf32>
    %13 = arith.subf %11, %12 : vector<1x128xf32>
    %14 = vector.broadcast %6 : vector<1x128xf32> to vector<16x128xf32>
    %15 = arith.subf %2, %14 : vector<16x128xf32>
    %cst_8 = arith.constant 9.99999974E-6 : f32
    %16 = vector.broadcast %cst_8 : f32 to vector<1x128xf32>
    %17 = arith.addf %13, %16 : vector<1x128xf32>
    %18 = math.rsqrt %17 : vector<1x128xf32>
    %19 = vector.broadcast %18 : vector<1x128xf32> to vector<16x128xf32>
    %20 = arith.mulf %15, %19 : vector<16x128xf32>
    %21 = vector.broadcast %0 : vector<1x128xf32> to vector<16x128xf32>
    %22 = arith.mulf %20, %21 : vector<16x128xf32>
    %23 = vector.broadcast %1 : vector<1x128xf32> to vector<16x128xf32>
    %24 = arith.addf %22, %23 : vector<16x128xf32>
    %c0_9 = arith.constant 0 : index
    %c0_10 = arith.constant 0 : index
    %25 = vector.load %arg3[%c0_9, %c0_10] : memref<16x128xf32, #tpu.memory_space<vmem>>, vector<16x128xf32>
    %cst_11 = arith.constant dense<0.000000e+00> : vector<128xf32>
    %26 = vector.multi_reduction <add>, %25, %cst_11 [0] : vector<16x128xf32> to vector<128xf32>
    %27 = vector.shape_cast %26 : vector<128xf32> to vector<1x128xf32>
    %cst_12 = arith.constant 6.250000e-02 : f32
    %28 = vector.broadcast %cst_12 : f32 to vector<1x128xf32>
    %29 = arith.mulf %27, %28 : vector<1x128xf32>
    %30 = arith.mulf %25, %25 : vector<16x128xf32>
    %cst_13 = arith.constant dense<0.000000e+00> : vector<128xf32>
    %31 = vector.multi_reduction <add>, %30, %cst_13 [0] : vector<16x128xf32> to vector<128xf32>
    %32 = vector.shape_cast %31 : vector<128xf32> to vector<1x128xf32>
    %cst_14 = arith.constant 6.250000e-02 : f32
    %33 = vector.broadcast %cst_14 : f32 to vector<1x128xf32>
    %34 = arith.mulf %32, %33 : vector<1x128xf32>
    %35 = arith.mulf %29, %29 : vector<1x128xf32>
    %36 = arith.subf %34, %35 : vector<1x128xf32>
    %37 = vector.broadcast %29 : vector<1x128xf32> to vector<16x128xf32>
    %38 = arith.subf %25, %37 : vector<16x128xf32>
    %cst_15 = arith.constant 9.99999974E-6 : f32
    %39 = vector.broadcast %cst_15 : f32 to vector<1x128xf32>
    %40 = arith.addf %36, %39 : vector<1x128xf32>
    %41 = math.rsqrt %40 : vector<1x128xf32>
    %42 = vector.broadcast %41 : vector<1x128xf32> to vector<16x128xf32>
    %43 = arith.mulf %38, %42 : vector<16x128xf32>
    %44 = vector.broadcast %0 : vector<1x128xf32> to vector<16x128xf32>
    %45 = arith.mulf %43, %44 : vector<16x128xf32>
    %46 = vector.broadcast %1 : vector<1x128xf32> to vector<16x128xf32>
    %47 = arith.addf %45, %46 : vector<16x128xf32>
    %48 = tpu.concatenate %24, %47 in 0 : vector<16x128xf32>, vector<16x128xf32> -> vector<32x128xf32>
    %c0_16 = arith.constant 0 : index
    %c0_17 = arith.constant 0 : index
    %49 = vector.load %arg6[%c0_16, %c0_17] : memref<32x32xf32, #tpu.memory_space<vmem>>, vector<32x32xf32>
    %cst_18 = arith.constant dense<0.000000e+00> : vector<32x128xf32>
    %50 = tpu.matmul %49, %48, %cst_18 {dimension_numbers = #tpu.dot_dimension_numbers<[1], [0], [0], [1], [0, 0, 1, 1], [], []>} : vector<32x32xf32>, vector<32x128xf32>, vector<32x128xf32> -> vector<32x128xf32>
    %51 = tpu.concatenate %48, %50 in 1 : vector<32x128xf32>, vector<32x128xf32> -> vector<32x256xf32>
    %c0_19 = arith.constant 0 : index
    %c0_20 = arith.constant 0 : index
    %c0_21 = arith.constant 0 : index
    %52 = vector.load %arg7[%c0_19, %c0_20, %c0_21] : memref<3x256x128xf32, #tpu.memory_space<vmem>>, vector<1x256x128xf32>
    %53 = vector.shape_cast %52 : vector<1x256x128xf32> to vector<256x128xf32>
    %cst_22 = arith.constant dense<0.000000e+00> : vector<32x128xf32>
    %54 = tpu.matmul %51, %53, %cst_22 {dimension_numbers = #tpu.dot_dimension_numbers<[1], [0], [0], [1], [0, 0, 1, 1], [], []>} : vector<32x256xf32>, vector<256x128xf32>, vector<32x128xf32> -> vector<32x128xf32>
    %c0_23 = arith.constant 0 : index
    %c0_24 = arith.constant 0 : index
    %c0_25 = arith.constant 0 : index
    %55 = vector.load %arg8[%c0_23, %c0_24, %c0_25] : memref<3x1x128xf32, #tpu.memory_space<vmem>>, vector<1x1x128xf32>
    %56 = vector.shape_cast %55 : vector<1x1x128xf32> to vector<1x128xf32>
    %57 = vector.broadcast %56 : vector<1x128xf32> to vector<32x128xf32>
    %58 = arith.addf %54, %57 : vector<32x128xf32>
    %cst_26 = arith.constant 0.000000e+00 : f32
    %59 = vector.broadcast %cst_26 : f32 to vector<32x128xf32>
    %60 = arith.maximumf %58, %59 : vector<32x128xf32>
    %61 = arith.addf %60, %48 : vector<32x128xf32>
    %cst_27 = arith.constant 0.000000e+00 : f32
    %62 = vector.broadcast %cst_27 : f32 to vector<32x128xf32>
    %63 = arith.maximumf %61, %62 : vector<32x128xf32>
    %cst_28 = arith.constant dense<0.000000e+00> : vector<32x128xf32>
    %64 = tpu.matmul %49, %63, %cst_28 {dimension_numbers = #tpu.dot_dimension_numbers<[1], [0], [0], [1], [0, 0, 1, 1], [], []>} : vector<32x32xf32>, vector<32x128xf32>, vector<32x128xf32> -> vector<32x128xf32>
    %65 = tpu.concatenate %63, %64 in 1 : vector<32x128xf32>, vector<32x128xf32> -> vector<32x256xf32>
    %c1 = arith.constant 1 : index
    %c0_29 = arith.constant 0 : index
    %c0_30 = arith.constant 0 : index
    %66 = vector.load %arg7[%c1, %c0_29, %c0_30] : memref<3x256x128xf32, #tpu.memory_space<vmem>>, vector<1x256x128xf32>
    %67 = vector.shape_cast %66 : vector<1x256x128xf32> to vector<256x128xf32>
    %cst_31 = arith.constant dense<0.000000e+00> : vector<32x128xf32>
    %68 = tpu.matmul %65, %67, %cst_31 {dimension_numbers = #tpu.dot_dimension_numbers<[1], [0], [0], [1], [0, 0, 1, 1], [], []>} : vector<32x256xf32>, vector<256x128xf32>, vector<32x128xf32> -> vector<32x128xf32>
    %c1_32 = arith.constant 1 : index
    %c0_33 = arith.constant 0 : index
    %c0_34 = arith.constant 0 : index
    %69 = vector.load %arg8[%c1_32, %c0_33, %c0_34] : memref<3x1x128xf32, #tpu.memory_space<vmem>>, vector<1x1x128xf32>
    %70 = vector.shape_cast %69 : vector<1x1x128xf32> to vector<1x128xf32>
    %71 = vector.broadcast %70 : vector<1x128xf32> to vector<32x128xf32>
    %72 = arith.addf %68, %71 : vector<32x128xf32>
    %cst_35 = arith.constant 0.000000e+00 : f32
    %73 = vector.broadcast %cst_35 : f32 to vector<32x128xf32>
    %74 = arith.maximumf %72, %73 : vector<32x128xf32>
    %75 = arith.addf %74, %48 : vector<32x128xf32>
    %cst_36 = arith.constant 0.000000e+00 : f32
    %76 = vector.broadcast %cst_36 : f32 to vector<32x128xf32>
    %77 = arith.maximumf %75, %76 : vector<32x128xf32>
    %cst_37 = arith.constant dense<0.000000e+00> : vector<32x128xf32>
    %78 = tpu.matmul %49, %77, %cst_37 {dimension_numbers = #tpu.dot_dimension_numbers<[1], [0], [0], [1], [0, 0, 1, 1], [], []>} : vector<32x32xf32>, vector<32x128xf32>, vector<32x128xf32> -> vector<32x128xf32>
    %79 = tpu.concatenate %77, %78 in 1 : vector<32x128xf32>, vector<32x128xf32> -> vector<32x256xf32>
    %c2 = arith.constant 2 : index
    %c0_38 = arith.constant 0 : index
    %c0_39 = arith.constant 0 : index
    %80 = vector.load %arg7[%c2, %c0_38, %c0_39] : memref<3x256x128xf32, #tpu.memory_space<vmem>>, vector<1x256x128xf32>
    %81 = vector.shape_cast %80 : vector<1x256x128xf32> to vector<256x128xf32>
    %cst_40 = arith.constant dense<0.000000e+00> : vector<32x128xf32>
    %82 = tpu.matmul %79, %81, %cst_40 {dimension_numbers = #tpu.dot_dimension_numbers<[1], [0], [0], [1], [0, 0, 1, 1], [], []>} : vector<32x256xf32>, vector<256x128xf32>, vector<32x128xf32> -> vector<32x128xf32>
    %c2_41 = arith.constant 2 : index
    %c0_42 = arith.constant 0 : index
    %c0_43 = arith.constant 0 : index
    %83 = vector.load %arg8[%c2_41, %c0_42, %c0_43] : memref<3x1x128xf32, #tpu.memory_space<vmem>>, vector<1x1x128xf32>
    %84 = vector.shape_cast %83 : vector<1x1x128xf32> to vector<1x128xf32>
    %85 = vector.broadcast %84 : vector<1x128xf32> to vector<32x128xf32>
    %86 = arith.addf %82, %85 : vector<32x128xf32>
    %cst_44 = arith.constant 0.000000e+00 : f32
    %87 = vector.broadcast %cst_44 : f32 to vector<32x128xf32>
    %88 = arith.maximumf %86, %87 : vector<32x128xf32>
    %89 = arith.addf %88, %48 : vector<32x128xf32>
    %cst_45 = arith.constant 0.000000e+00 : f32
    %90 = vector.broadcast %cst_45 : f32 to vector<32x128xf32>
    %91 = arith.maximumf %89, %90 : vector<32x128xf32>
    %c0_46 = arith.constant 0 : index
    %c0_47 = arith.constant 0 : index
    %92 = vector.load %arg16[%c0_46, %c0_47] : memref<32x128xf32, #tpu.memory_space<vmem>>, vector<32x128xf32>
    tpu.vector_store %arg16[%c0_46, %c0_47], %91 {strides = array<i32>} : memref<32x128xf32, #tpu.memory_space<vmem>>, vector<32x128xf32>,
    %c0_48 = arith.constant 0 : index
    %93 = memref.load %arg0[%c0_48] : memref<8xi32, #tpu.memory_space<smem>>
    %94 = arith.index_cast %93 : i32 to index
    %c0_49 = arith.constant 0 : index
    %95 = vector.load %arg16[%94, %c0_49] : memref<32x128xf32, #tpu.memory_space<vmem>>, vector<1x128xf32>
    %c1_50 = arith.constant 1 : index
    %96 = memref.load %arg0[%c1_50] : memref<8xi32, #tpu.memory_space<smem>>
    %97 = arith.index_cast %96 : i32 to index
    %c0_51 = arith.constant 0 : index
    %98 = vector.load %arg16[%97, %c0_51] : memref<32x128xf32, #tpu.memory_space<vmem>>, vector<1x128xf32>
    %c2_52 = arith.constant 2 : index
    %99 = memref.load %arg0[%c2_52] : memref<8xi32, #tpu.memory_space<smem>>
    %100 = arith.index_cast %99 : i32 to index
    %c0_53 = arith.constant 0 : index
    %101 = vector.load %arg16[%100, %c0_53] : memref<32x128xf32, #tpu.memory_space<vmem>>, vector<1x128xf32>
    %c3 = arith.constant 3 : index
    %102 = memref.load %arg0[%c3] : memref<8xi32, #tpu.memory_space<smem>>
    %103 = arith.index_cast %102 : i32 to index
    %c0_54 = arith.constant 0 : index
    %104 = vector.load %arg16[%103, %c0_54] : memref<32x128xf32, #tpu.memory_space<vmem>>, vector<1x128xf32>
    %c4 = arith.constant 4 : index
    %105 = memref.load %arg0[%c4] : memref<8xi32, #tpu.memory_space<smem>>
    %106 = arith.index_cast %105 : i32 to index
    %c0_55 = arith.constant 0 : index
    %107 = vector.load %arg16[%106, %c0_55] : memref<32x128xf32, #tpu.memory_space<vmem>>, vector<1x128xf32>
    %c5 = arith.constant 5 : index
    %108 = memref.load %arg0[%c5] : memref<8xi32, #tpu.memory_space<smem>>
    %109 = arith.index_cast %108 : i32 to index
    %c0_56 = arith.constant 0 : index
    %110 = vector.load %arg16[%109, %c0_56] : memref<32x128xf32, #tpu.memory_space<vmem>>, vector<1x128xf32>
    %c6 = arith.constant 6 : index
    %111 = memref.load %arg0[%c6] : memref<8xi32, #tpu.memory_space<smem>>
    %112 = arith.index_cast %111 : i32 to index
    %c0_57 = arith.constant 0 : index
    %113 = vector.load %arg16[%112, %c0_57] : memref<32x128xf32, #tpu.memory_space<vmem>>, vector<1x128xf32>
    %c7 = arith.constant 7 : index
    %114 = memref.load %arg0[%c7] : memref<8xi32, #tpu.memory_space<smem>>
    %115 = arith.index_cast %114 : i32 to index
    %c0_58 = arith.constant 0 : index
    %116 = vector.load %arg16[%115, %c0_58] : memref<32x128xf32, #tpu.memory_space<vmem>>, vector<1x128xf32>
    %c0_59 = arith.constant 0 : index
    %117 = memref.load %arg1[%c0_59] : memref<8xi32, #tpu.memory_space<smem>>
    %c16_i32 = arith.constant 16 : i32
    %118 = arith.addi %117, %c16_i32 : i32
    %119 = arith.index_cast %118 : i32 to index
    %c0_60 = arith.constant 0 : index
    %120 = vector.load %arg16[%119, %c0_60] : memref<32x128xf32, #tpu.memory_space<vmem>>, vector<1x128xf32>
    %c1_61 = arith.constant 1 : index
    %121 = memref.load %arg1[%c1_61] : memref<8xi32, #tpu.memory_space<smem>>
    %c16_i32_62 = arith.constant 16 : i32
    %122 = arith.addi %121, %c16_i32_62 : i32
    %123 = arith.index_cast %122 : i32 to index
    %c0_63 = arith.constant 0 : index
    %124 = vector.load %arg16[%123, %c0_63] : memref<32x128xf32, #tpu.memory_space<vmem>>, vector<1x128xf32>
    %c2_64 = arith.constant 2 : index
    %125 = memref.load %arg1[%c2_64] : memref<8xi32, #tpu.memory_space<smem>>
    %c16_i32_65 = arith.constant 16 : i32
    %126 = arith.addi %125, %c16_i32_65 : i32
    %127 = arith.index_cast %126 : i32 to index
    %c0_66 = arith.constant 0 : index
    %128 = vector.load %arg16[%127, %c0_66] : memref<32x128xf32, #tpu.memory_space<vmem>>, vector<1x128xf32>
    %c3_67 = arith.constant 3 : index
    %129 = memref.load %arg1[%c3_67] : memref<8xi32, #tpu.memory_space<smem>>
    %c16_i32_68 = arith.constant 16 : i32
    %130 = arith.addi %129, %c16_i32_68 : i32
    %131 = arith.index_cast %130 : i32 to index
    %c0_69 = arith.constant 0 : index
    %132 = vector.load %arg16[%131, %c0_69] : memref<32x128xf32, #tpu.memory_space<vmem>>, vector<1x128xf32>
    %c4_70 = arith.constant 4 : index
    %133 = memref.load %arg1[%c4_70] : memref<8xi32, #tpu.memory_space<smem>>
    %c16_i32_71 = arith.constant 16 : i32
    %134 = arith.addi %133, %c16_i32_71 : i32
    %135 = arith.index_cast %134 : i32 to index
    %c0_72 = arith.constant 0 : index
    %136 = vector.load %arg16[%135, %c0_72] : memref<32x128xf32, #tpu.memory_space<vmem>>, vector<1x128xf32>
    %c5_73 = arith.constant 5 : index
    %137 = memref.load %arg1[%c5_73] : memref<8xi32, #tpu.memory_space<smem>>
    %c16_i32_74 = arith.constant 16 : i32
    %138 = arith.addi %137, %c16_i32_74 : i32
    %139 = arith.index_cast %138 : i32 to index
    %c0_75 = arith.constant 0 : index
    %140 = vector.load %arg16[%139, %c0_75] : memref<32x128xf32, #tpu.memory_space<vmem>>, vector<1x128xf32>
    %c6_76 = arith.constant 6 : index
    %141 = memref.load %arg1[%c6_76] : memref<8xi32, #tpu.memory_space<smem>>
    %c16_i32_77 = arith.constant 16 : i32
    %142 = arith.addi %141, %c16_i32_77 : i32
    %143 = arith.index_cast %142 : i32 to index
    %c0_78 = arith.constant 0 : index
    %144 = vector.load %arg16[%143, %c0_78] : memref<32x128xf32, #tpu.memory_space<vmem>>, vector<1x128xf32>
    %c7_79 = arith.constant 7 : index
    %145 = memref.load %arg1[%c7_79] : memref<8xi32, #tpu.memory_space<smem>>
    %c16_i32_80 = arith.constant 16 : i32
    %146 = arith.addi %145, %c16_i32_80 : i32
    %147 = arith.index_cast %146 : i32 to index
    %c0_81 = arith.constant 0 : index
    %148 = vector.load %arg16[%147, %c0_81] : memref<32x128xf32, #tpu.memory_space<vmem>>, vector<1x128xf32>
    %149 = tpu.concatenate %95, %98, %101, %104, %107, %110, %113, %116 in 0 : vector<1x128xf32>, vector<1x128xf32>, vector<1x128xf32>, vector<1x128xf32>, vector<1x128xf32>, vector<1x128xf32>, vector<1x128xf32>, vector<1x128xf32> -> vector<8x128xf32>
    %150 = tpu.concatenate %120, %124, %128, %132, %136, %140, %144, %148 in 0 : vector<1x128xf32>, vector<1x128xf32>, vector<1x128xf32>, vector<1x128xf32>, vector<1x128xf32>, vector<1x128xf32>, vector<1x128xf32>, vector<1x128xf32> -> vector<8x128xf32>
    %151 = tpu.concatenate %149, %150 in 1 : vector<8x128xf32>, vector<8x128xf32> -> vector<8x256xf32>
    %c0_82 = arith.constant 0 : index
    %c0_83 = arith.constant 0 : index
    %152 = vector.load %arg9[%c0_82, %c0_83] : memref<256x128xf32, #tpu.memory_space<vmem>>, vector<256x128xf32>
    %cst_84 = arith.constant dense<0.000000e+00> : vector<8x128xf32>
    %153 = tpu.matmul %151, %152, %cst_84 {dimension_numbers = #tpu.dot_dimension_numbers<[1], [0], [0], [1], [0, 0, 1, 1], [], []>} : vector<8x256xf32>, vector<256x128xf32>, vector<8x128xf32> -> vector<8x128xf32>
    %c0_85 = arith.constant 0 : index
    %c0_86 = arith.constant 0 : index
    %154 = vector.load %arg10[%c0_85, %c0_86] : memref<1x128xf32, #tpu.memory_space<vmem>>, vector<1x128xf32>
    %155 = vector.broadcast %154 : vector<1x128xf32> to vector<8x128xf32>
    %156 = arith.addf %153, %155 : vector<8x128xf32>
    %cst_87 = arith.constant 0.000000e+00 : f32
    %157 = vector.broadcast %cst_87 : f32 to vector<8x128xf32>
    %158 = arith.maximumf %156, %157 : vector<8x128xf32>
    %c0_88 = arith.constant 0 : index
    %c0_89 = arith.constant 0 : index
    %159 = vector.load %arg11[%c0_88, %c0_89] : memref<128x64xf32, #tpu.memory_space<vmem>>, vector<128x64xf32>
    %cst_90 = arith.constant dense<0.000000e+00> : vector<8x64xf32>
    %160 = tpu.matmul %158, %159, %cst_90 {dimension_numbers = #tpu.dot_dimension_numbers<[1], [0], [0], [1], [0, 0, 1, 1], [], []>} : vector<8x128xf32>, vector<128x64xf32>, vector<8x64xf32> -> vector<8x64xf32>
    %c0_91 = arith.constant 0 : index
    %c0_92 = arith.constant 0 : index
    %161 = vector.load %arg12[%c0_91, %c0_92] : memref<1x64xf32, #tpu.memory_space<vmem>>, vector<1x64xf32>
    %162 = vector.broadcast %161 : vector<1x64xf32> to vector<8x64xf32>
    %163 = arith.addf %160, %162 : vector<8x64xf32>
    %cst_93 = arith.constant 0.000000e+00 : f32
    %164 = vector.broadcast %cst_93 : f32 to vector<8x64xf32>
    %165 = arith.maximumf %163, %164 : vector<8x64xf32>
    %c0_94 = arith.constant 0 : index
    %c0_95 = arith.constant 0 : index
    %166 = vector.load %arg13[%c0_94, %c0_95] : memref<64x1xf32, #tpu.memory_space<vmem>>, vector<64x1xf32>
    %cst_96 = arith.constant dense<0.000000e+00> : vector<8x1xf32>
    %167 = tpu.matmul %165, %166, %cst_96 {dimension_numbers = #tpu.dot_dimension_numbers<[1], [0], [0], [1], [0, 0, 1, 1], [], []>} : vector<8x64xf32>, vector<64x1xf32>, vector<8x1xf32> -> vector<8x1xf32>
    %c0_97 = arith.constant 0 : index
    %c0_98 = arith.constant 0 : index
    %168 = vector.load %arg14[%c0_97, %c0_98] : memref<1x1xf32, #tpu.memory_space<vmem>>, vector<1x1xf32>
    %169 = vector.broadcast %168 : vector<1x1xf32> to vector<8x1xf32>
    %170 = arith.addf %167, %169 : vector<8x1xf32>
    %c0_99 = arith.constant 0 : index
    %c0_100 = arith.constant 0 : index
    %171 = vector.load %arg15[%c0_99, %c0_100] : memref<8x1xf32, #tpu.memory_space<vmem>>, vector<8x1xf32>
    tpu.vector_store %arg15[%c0_99, %c0_100], %170 {strides = array<i32>} : memref<8x1xf32, #tpu.memory_space<vmem>>, vector<8x1xf32>,
    return
  }
}

</mosaic_0001>

<bundles_post_ra>
// kernel: tpu_custom_call.1
= control target key start
LH: loop header
LB: loop body
LE: loop exit
PB: predicated region body
PF: predicated region fallthrough
CT: control target
= control target key end

     0   :  { %s2525_s0 = inlined_call_operand.vmem [shape: s32[8], index: 0, kind: input, shape index: {}]   ;;  %s2526_s2 = inlined_call_operand.hbm [shape: f32[16,128], index: 2, kind: input, shape index: {}]   ;;  %s2527_s3 = inlined_call_operand.hbm [shape: f32[16,128], index: 3, kind: input, shape index: {}]   ;;  %s2528_s4 = inlined_call_operand.vmem [shape: f32[1,128], index: 4, kind: input, shape index: {}]   ;;  %s2529_s5 = inlined_call_operand.hbm [shape: f32[1,128], index: 5, kind: input, shape index: {}]   ;;  %s2530_s6 = inlined_call_operand.vmem [shape: f32[32,32], index: 6, kind: input, shape index: {}]   ;;  %s2531_s7 = inlined_call_operand.hbm [shape: f32[3,256,128], index: 7, kind: input, shape index: {}]   ;;  %s2532_s8 = inlined_call_operand.vmem [shape: f32[3,1,128], index: 8, kind: input, shape index: {}]   ;;  %s2533_s9 = inlined_call_operand.vmem [shape: f32[256,128], index: 9, kind: input, shape index: {}]   ;;  %s2534_s10 = inlined_call_operand.vmem [shape: f32[1,128], index: 10, kind: input, shape index: {}]   ;;  %s2535_s11 = inlined_call_operand.vmem [shape: f32[128,64], index: 11, kind: input, shape index: {}]   ;;  %s2536_s12 = inlined_call_operand.vmem [shape: f32[1,64], index: 12, kind: input, shape index: {}]   ;;  %s2537_s13 = inlined_call_operand.vmem [shape: f32[64,1], index: 13, kind: input, shape index: {}]   ;;  %s2538_s15 = inlined_call_operand.vmem [shape: f32[8,1], index: 15, kind: output, shape index: {}]   ;;  %s2539_s1 = inlined_call_operand.vmem [shape: s32[8], index: 1, kind: input, shape index: {}]   ;;  %s2540_s14 = inlined_call_operand.<no memory space> [shape: f32[1,1], index: 14, kind: input, shape index: {}]  }
   0x1   :  { %2541 = sst [smem:[#allocation18_spill]] %s2536_s12  ;;  %s20_s20 = sshll.u32 %s2525_s0, 4  ;;  %v28_v0 = vstv %s2540_s14  ;;  %s21_s20 = int_to_ptr.vmem [resolvable:$true] %s20_s20 }
   0x2   :  { %s24_s23 = sshll.u32 %s2539_s1, 4  ;;  %29 = vst [vmem:[#allocation6] sm:$0x1] %v28_v0  ;;  %s1883_s25 = scalar_lea.vmem %s21_s20, 16  ;;  %s25_s23 = int_to_ptr.vmem [resolvable:$true] %s24_s23 }
   0x3   :  { %p1884_p0 = scmp.ne.s32.totalorder %s21_s20, %s1883_s25  ;;  %p1888_p1 = scmp.lt.s32.totalorder %s21_s20, %s21_s20 }
   0x4   :  { %p1889_p2 = scmp.lt.s32.totalorder %s1883_s25, %s1883_s25 }
   0x6   :  { %p1890_p3 = por %p1889_p2, %p1888_p1 }
   0x8   :  { %p1891_p4 = pnand %p1890_p3, %p1884_p0 }
   0xa   :  { %1894 = shalt.err (!%p1891_p4)  }
   0xb   :  { %s2003_s26 = smov [#allocation4]   ;;  %s1895_s0 = scalar_lea.vmem %s25_s23, 16 }
   0xc   :  { %23 = dma.vmem_to_smem %s21_s20, 16, %s2003_s26, [#allocation3] }
   0xd   :  { %p1896_p5 = scmp.ne.s32.totalorder %s25_s23, %s1895_s0  ;;  %p1900_p6 = scmp.lt.s32.totalorder %s25_s23, %s25_s23 }
   0xe   :  { %p1901_p7 = scmp.lt.s32.totalorder %s1895_s0, %s1895_s0 }
  0x10   :  { %p1902_p8 = por %p1901_p7, %p1900_p6 }
  0x12   :  { %p1903_p9 = pnand %p1902_p8, %p1896_p5 }
  0x14   :  { %1906 = shalt.err (!%p1903_p9)  }
  0x15   :  { %s2004_s1 = smov [#allocation5]  }
  0x16   :  { %27 = dma.vmem_to_smem %s25_s23, 16, %s2004_s1, [#allocation3] }
  0x17   :  { %1995 = dma.done.wait [#allocation3], 32 }
  0x18   :  { %1996 = vsyncadd [#allocation3], 4294967264 }
  0x19   :  { %31 = sfence }
  0x1a   :  { %32 = vsyncpa [#allocation8], 0 }
  0x1b   :  { %33 = vsyncpa [#allocation10], 0 }
  0x1c   :  { %34 = vsyncpa [#allocation13], 0  ;;  %s2005_s12 = smov [#allocation9]   ;;  %s2006_s27 = smov [#allocation7]  }
  0x1d   :  { %s52_s14 = sshll.u32 %s2005_s12, 4  ;;  %s40_s28 = sshll.u32 %s2006_s27, 4  ;;  %s53_s14 = int_to_ptr.vmem [resolvable:$true] %s52_s14  ;;  %s2103_s28 = int_to_ptr.vmem [resolvable:$true] %s40_s28 }
  0x1e   :  { %s1907_s16 = scalar_lea.hbm %s2527_s3, 256 }
  0x1f   :  { %p1908_p10 = scmp.ne.s32.totalorder %s2527_s3, %s1907_s16  ;;  %p1911_p11 = scmp.lt.u32.totalorder %s1907_s16, %s2527_s3 }
  0x21   :  { %p1913_p12 = pnand %p1911_p11, %p1908_p10 }
  0x23   :  { %1916 = shalt.err (!%p1913_p12)
}
  0x24   :  { %s1917_s21 = scalar_lea.vmem %s53_s14, 256  ;;  %p1922_p0 = scmp.lt.s32.totalorder %s53_s14, %s53_s14 }
  0x25   :  { %p1918_p13 = scmp.ne.s32.totalorder %s53_s14, %s1917_s21  ;;  %p1923_p1 = scmp.lt.s32.totalorder %s1917_s21, %s1917_s21 }
  0x27   :  { %p1924_p2 = por %p1923_p1, %p1922_p0 }
  0x29   :  { %p1925_p3 = pnand %p1924_p2, %p1918_p13 }
  0x2b   :  { %1928 = shalt.err (!%p1925_p3)
}
  0x2c   :  { %s2007_s22 = smov 128   ;;  %s2008_s23 = smov 8  }
  0x2d   :  { %58 = dma.hbm_to_vmem [thread:$0]  %s2527_s3, 256, %s53_s14, [#allocation10], %s2007_s22, %s2007_s22, %s2008_s23  }
  0x2e   :  { %s1929_s1 = scalar_lea.hbm %s2526_s2, 256 }
  0x2f   :  { %p1930_p4 = scmp.ne.s32.totalorder %s2526_s2, %s1929_s1  ;;  %p1933_p5 = scmp.lt.u32.totalorder %s1929_s1, %s2526_s2 }
  0x31   :  { %p1935_p6 = pnand %p1933_p5, %p1930_p4 }
  0x33   :  { %1938 = shalt.err (!%p1935_p6)
}
  0x34   :  { %s1939_s16 = scalar_lea.vmem %s2103_s28, 256  ;;  %p1944_p8 = scmp.lt.s32.totalorder %s2103_s28, %s2103_s28 }
  0x35   :  { %p1940_p7 = scmp.ne.s32.totalorder %s2103_s28, %s1939_s16  ;;  %p1945_p9 = scmp.lt.s32.totalorder %s1939_s16, %s1939_s16 }
  0x37   :  { %p1946_p10 = por %p1945_p9, %p1944_p8 }
  0x39   :  { %p1947_p11 = pnand %p1946_p10, %p1940_p7 }
  0x3b   :  { %1950 = shalt.err (!%p1947_p11)
}
  0x3c   :  { %46 = dma.hbm_to_vmem [thread:$0]  %s2526_s2, 256, %s2103_s28, [#allocation8], %s2007_s22, %s2007_s22, %s2008_s23  }
  0x3d   :  { %s2009_s17 = smov [#allocation11]   ;;  %s2010_s19 = smov [#allocation12]  }
  0x3e   :  { %s67_s18 = sshll.u32 %s2009_s17, 4  ;;  %s78_s20 = sshll.u32 %s2010_s19, 4  ;;  %s68_s18 = int_to_ptr.vmem [resolvable:$true] %s67_s18  ;;  %s2140_s20 = int_to_ptr.vmem [resolvable:$true] %s78_s20 }
  0x3f   :  { %s1951_s25 = scalar_lea.hbm %s2529_s5, 16 }
  0x40   :  { %p1952_p12 = scmp.ne.s32.totalorder %s2529_s5, %s1951_s25  ;;  %p1955_p13 = scmp.lt.u32.totalorder %s1951_s25, %s2529_s5 }
  0x42   :  { %p1957_p0 = pnand %p1955_p13, %p1952_p12 }
  0x44   :  { %1960 = shalt.err (!%p1957_p0)
}
  0x45   :  { %s1961_s2 = scalar_lea.vmem %s68_s18, 16  ;;  %s1965_s28 = scalar_lea.vmem %s68_s18, 32 }
  0x46   :  { %p1962_p1 = scmp.ne.s32.totalorder %s68_s18, %s1961_s2  ;;  %p1966_p2 = scmp.lt.s32.totalorder %s68_s18, %s68_s18 }
  0x47   :  { %p1967_p3 = scmp.lt.s32.totalorder %s1965_s28, %s1961_s2 }
  0x49   :  { %p1968_p4 = por %p1967_p3, %p1966_p2 }
  0x4b   :  { %p1969_p5 = pnand %p1968_p4, %p1962_p1 }
  0x4d   :  { %1972 = shalt.err (!%p1969_p5)
}
  0x4e   :  { %70 = dma.hbm_to_vmem [thread:$0]  %s2529_s5, 16, %s68_s18, [#allocation10]  }
  0x4f   :  { %s1973_s3 = scalar_lea.hbm %s2531_s7, 12288 }
  0x50   :  { %p1974_p6 = scmp.ne.s32.totalorder %s2531_s7, %s1973_s3  ;;  %p1977_p7 = scmp.lt.u32.totalorder %s1973_s3, %s2531_s7 }
  0x52   :  { %p1979_p8 = pnand %p1977_p7, %p1974_p6 }
  0x54   :  { %1982 = shalt.err (!%p1979_p8)
}
  0x55   :  { %s1983_s24 = scalar_lea.vmem %s2140_s20, 12288  ;;  %p1988_p10 = scmp.lt.s32.totalorder %s2140_s20, %s2140_s20 }
  0x56   :  { %p1984_p9 = scmp.ne.s32.totalorder %s2140_s20, %s1983_s24  ;;  %p1989_p11 = scmp.lt.s32.totalorder %s1983_s24, %s1983_s24 }
  0x58   :  { %p1990_p12 = por %p1989_p11, %p1988_p10 }
  0x5a   :  { %p1991_p13 = pnand %p1990_p12, %p1984_p9 }
  0x5c   :  { %1994 = shalt.err (!%p1991_p13)
}
  0x5d   :  { %84 = dma.hbm_to_vmem [thread:$0]  %s2531_s7, 12288, %s2140_s20, [#allocation13], %s2007_s22, %s2007_s22, %s2008_s23  }
  0x5e   :  { %1997 = dma.done.wait [#allocation8], 256  }
  0x5f   :  { %1998 = vsyncadd [#allocation8], 4294967040 }
  0x60   :  { %1999 = dma.done.wait [#allocation10], 272  }
  0x61   :  { %2000 = vsyncadd [#allocation10], 4294967024 }
  0x62   :  { %2001 = dma.done.wait [#allocation13], 12288  }
  0x63   :  { %2002 = vsyncadd [#allocation13], 4294955008  ;;  %v113_v1 = vld [vmem:[#allocation7] sm:$0xff]  ;;  %vm193_vm0 = vcmask 261120   ;;  %v114_v2 = vld [vmem:[#allocation7 + $0x8] sm:$0xff]  ;;  %s1349_s22 = sld [smem:[#allocation5 + $0x1]] }
  0x64   :  { %v123_v3 = vmul.f32 %v113_v1, %v113_v1  ;;  %v157_v4 = vld [vmem:[#allocation9] sm:$0xff]  ;;  %v158_v5 = vld [vmem:[#allocation9 + $0x8] sm:$0xff]  ;;  %v115_v6 = vadd.f32 %v114_v2, %v113_v1  ;;  %v124_v7 = vmul.f32 %v114_v2, %v114_v2  ;;  %v1323_v57 = vld [vmem:[#allocation11] ss:$0 sm:$0xff]  ;;  %s1353_s23 = sld [smem:[#allocation5 + $0x3]]  ;;  %s1355_s20 = sld [smem:[#allocation5 + $0x4]] }
  0x65   :  { %v159_v8 = vadd.f32 %v158_v5, %v157_v4  ;;  %v167_v9 = vmul.f32 %v157_v4, %v157_v4  ;;  %v2177_v10 = vld [vmem:[%s2530_s6] sm:$0xff]  ;;  %v168_v11 = vmul.f32 %v158_v5, %v158_v5  ;;  %s2428_s0 = sld [smem:[#allocation5 + $0x5]]  ;;  %s2430_s1 = sld [smem:[#allocation5 + $0x6]]  ;;  %vm954_vm1 = vcmask 1040384  }
  0x66   :  { %1592 = vmatprep.mubr.msk.f32.mxu1 %vm193_vm0, %v2177_v10  ;;  %1606 = vmatprep.mubr.msk.f32.mxu0 %vm193_vm0, %v2177_v10  ;;  %v116_v12 = vrot.slane %v115_v6, 4  ;;  %v125_v13 = vadd.f32 %v124_v7, %v123_v3  ;;  %v1322_v53 = vld [vmem:[%s2528_s4] ss:$0 sm:$0xff]  ;;  %v308_v7 = vld [vmem:[#allocation12 + $0x88] sm:$0xff]  ;;  %s1351_s4 = sld [smem:[#allocation5 + $0x2]]  ;;  %s2434_s12 = sld [smem:[#allocation4]] }
  0x67   :  { %v160_v14 = vrot.slane %v159_v8, 4  ;;  %v169_v15 = vadd.f32 %v168_v11, %v167_v9  ;;  %v291_v9 = vld [vmem:[#allocation12] sm:$0xff]  ;;  %v292_v11 = vld [vmem:[#allocation12 + $0x8] sm:$0xff]  ;;  %s2438_s2 = sld [smem:[#allocation4 + $0x2]]  ;;  %s2440_s28 = sld [smem:[#allocation4 + $0x3]]  ;;  %vm956_vm2 = vcmask 1041408  }
  0x68   :  { %v117_v16 = vadd.f32 %v116_v12, %v115_v6  ;;  %v126_v17 = vrot.slane %v125_v13, 4  ;;  %v307_v6 = vld [vmem:[#allocation12 + $0x80] sm:$0xff]  ;;  %v309_v12 = vld [vmem:[#allocation12 + $0x90] sm:$0xff]  ;;  %s2442_s27 = sld [smem:[#allocation4 + $0x4]]  ;;  %s2444_s29 = sld [smem:[#allocation4 + $0x5]]  ;;  %vm958_vm3 = vcmask 1042432  }
  0x69   :  { %v161_v18 = vadd.f32 %v160_v14, %v159_v8  ;;  %v170_v19 = vrot.slane %v169_v15, 4  ;;  %v1688_v8 = vpack.c.bf16 %v308_v7, %v307_v6  ;;  %v2201_v14 = vld [vmem:[%s2530_s6 + $0x8] sm:$0xff]  ;;  %s2446_s30 = sld [smem:[#allocation4 + $0x6]]  ;;  %s2448_s16 = sld [smem:[#allocation4 + $0x7]]  ;;  %vm960_vm4 = vcmask 1043456  }
  0x6a   :  { %v118_v20 = vrot.slane %v117_v16, 2  ;;  %v127_v21 = vadd.f32 %v126_v17, %v125_v13  ;;  %v310_v13 = vld [vmem:[#allocation12 + $0x98] sm:$0xff]  ;;  %s1308_s3 = scalar_lea.vmem [#allocation2], %s1349_s22  ;;  %s1312_s17 = scalar_lea.vmem [#allocation2], %s1353_s23  ;;  %vm962_vm5 = vcmask 1044480   ;;  %vm964_vm6 = vcmask 1045504  }
  0x6b   :  { %v162_v22 = vrot.slane %v161_v18, 2  ;;  %v171_v23 = vadd.f32 %v170_v19, %v169_v15  ;;  %v1690_v15 = vpack.c.bf16 %v292_v11, %v291_v9  ;;  %v1692_v17 = vpack.c.bf16 %v310_v13, %v309_v12  ;;  %v294_v19 = vld [vmem:[#allocation12 + $0x18] sm:$0xff]  ;;  %s1314_s19 = scalar_lea.vmem [#allocation2], %s1355_s20  ;;  %s1316_s24 = scalar_lea.vmem [#allocation2], %s2428_s0 }
  0x6c   :  { %v119_v24 = vadd.f32 %v118_v20, %v117_v16  ;;  %v128_v25 = vrot.slane %v127_v21, 2  ;;  %v2206_v16 = vld [vmem:[%s2530_s6 + $0x10] sm:$0xff]  ;;  %v311_v20 = vld [vmem:[#allocation12 + $0xa0] sm:$0xff]  ;;  %s1310_s14 = scalar_lea.vmem [#allocation2], %s1351_s4  ;;  %s1318_s5 = scalar_lea.vmem [#allocation2], %s2430_s1  ;;  %vm966_vm7 = vcmask 1046528  }
  0x6d   :  { %v163_v26 = vadd.f32 %v162_v22, %v161_v18  ;;  %v172_v27 = vrot.slane %v171_v23, 2  ;;  %v293_v18 = vld [vmem:[#allocation12 + $0x10] sm:$0xff]  ;;  %s884_s25 = scalar_lea.vmem [#allocation2], %s2438_s2  ;;  %s887_s7 = scalar_lea.vmem [#allocation2], %s2440_s28  ;;  %vm2012_vm8 = vmmov 0   ;;  %vm1215_vm9 = vcmask 523264  }
  0x6e   :  { %v120_v28 = vrot.slane %v119_v24, 1  ;;  %v129_v29 = vadd.f32 %v128_v25, %v127_v21  ;;  %v312_v21 = vld [vmem:[#allocation12 + $0xa8] sm:$0xff]  ;;  %v2215_v22 = vld [vmem:[%s2530_s6 + $0x18] sm:$0xff]  ;;  %v295_v25 = vld [vmem:[#allocation12 + $0x20] sm:$0xff]  ;;  %s2436_s6 = sld [smem:[#allocation4 + $0x1]]  ;;  %s878_s22 = scalar_lea.vmem [#allocation2], %s2434_s12 }
  0x6f   :  { %v164_v30 = vrot.slane %v163_v26, 1  ;;  %v173_v31 = vadd.f32 %v172_v27, %v171_v23  ;;  %v1694_v23 = vpack.c.bf16 %v294_v19, %v293_v18  ;;  %v313_v27 = vld [vmem:[#allocation12 + $0xb0] sm:$0xff]  ;;  %s893_s4 = scalar_lea.vmem [#allocation2], %s2444_s29  ;;  %s896_s23 = scalar_lea.vmem [#allocation2], %s2446_s30  ;;  %vm1289_vm10 = vcmask 7168  }
  0x70   :  { %v121_v32 = vadd.f32 %v120_v28, %v119_v24  ;;  %v130_v33 = vrot.slane %v129_v29, 1  ;;  %v1696_v24 = vpack.c.bf16 %v312_v21, %v311_v20  ;;  %v314_v28 = vld [vmem:[#allocation12 + $0xb8] sm:$0xff]  ;;  %s899_s20 = scalar_lea.vmem [#allocation2], %s2448_s16  ;;  %s2542_s0 = sld [smem:[#allocation18_spill]] }
  0x71   :  { %v165_v34 = vadd.f32 %v164_v30, %v163_v26  ;;  %v174_v35 = vrot.slane %v173_v31, 1  ;;  %v296_v26 = vld [vmem:[#allocation12 + $0x28] sm:$0xff]  ;;  %v1700_v30 = vpack.c.bf16 %v314_v28, %v313_v27 }
  0x72   :  { %v122_v36 = vmul.f32 0.0625, %v121_v32  ;;  %v131_v37 = vadd.f32 %v130_v33, %v129_v29  ;;  %v1698_v29 = vpack.c.bf16 %v296_v26, %v295_v25  ;;  %v298_v32 = vld [vmem:[#allocation12 + $0x38] sm:$0xff]  ;;  %v315_v33 = vld [vmem:[#allocation12 + $0xc0] sm:$0xff] }
  0x73   :  { %v166_v38 = vmul.f32 0.0625, %v165_v34  ;;  %v175_v39 = vadd.f32 %v174_v35, %v173_v31  ;;  %v297_v31 = vld [vmem:[#allocation12 + $0x30] sm:$0xff]  ;;  %v316_v34 = vld [vmem:[#allocation12 + $0xc8] sm:$0xff] }
  0x74   :  { %v132_v40 = vmul.f32 0.0625, %v131_v37  ;;  %v133_v41 = vmul.f32 %v122_v36, %v122_v36  ;;  %v135_v48 = vsub.f32 %v113_v1, %v122_v36  ;;  %v136_v49 = vsub.f32 %v114_v2, %v122_v36  ;;  %v299_v37 = vld [vmem:[#allocation12 + $0x40] sm:$0xff]  ;;  %s881_s18 = scalar_lea.vmem [#allocation2], %s2436_s6 }
  0x75   :  { %v176_v42 = vmul.f32 0.0625, %v175_v39  ;;  %v177_v43 = vmul.f32 %v166_v38, %v166_v38  ;;  %v179_v50 = vsub.f32 %v157_v4, %v166_v38  ;;  %v180_v51 = vsub.f32 %v158_v5, %v166_v38  ;;  %v300_v38 = vld [vmem:[#allocation12 + $0x48] sm:$0xff]  ;;  %v317_v39 = vld [vmem:[#allocation12 + $0xd0] sm:$0xff] }
  0x76   :  { %v134_v44 = vsub.f32 %v132_v40, %v133_v41  ;;  %v1702_v35 = vpack.c.bf16 %v298_v32, %v297_v31  ;;  %v1704_v36 = vpack.c.bf16 %v316_v34, %v315_v33  ;;  %v318_v40 = vld [vmem:[#allocation12 + $0xd8] sm:$0xff]  ;;  %v1706_v41 = vpack.c.bf16 %v300_v38, %v299_v37  ;;  %v529_v33 = vld [vmem:[#allocation12 + $0x180] sm:$0xff]  ;;  %v530_v34 = vld [vmem:[#allocation12 + $0x188] sm:$0xff] }
  0x77   :  { %v178_v45 = vsub.f32 %v176_v42, %v177_v43  ;;  %v1708_v42 = vpack.c.bf16 %v318_v40, %v317_v39  ;;  %v301_v43 = vld [vmem:[#allocation12 + $0x50] sm:$0xff]  ;;  %v1728_v38 = vpack.c.bf16 %v530_v34, %v529_v33  ;;  %v513_v39 = vld [vmem:[#allocation12 + $0x100] sm:$0xff]  ;;  %v514_v40 = vld [vmem:[#allocation12 + $0x108] sm:$0xff] }
  0x78   :  { %v137_v46 = vadd.f32 1e-05, %v134_v44  ;;  %v302_v44 = vld [vmem:[#allocation12 + $0x58] sm:$0xff] }
  0x79   :  { %v181_v47 = vadd.f32 1e-05, %v178_v45  ;;  %v319_v45 = vld [vmem:[#allocation12 + $0xe0] sm:$0xff] }
  0x7a   :  { %1879 = vrsqrt.f32 %v137_v46  ;;  %v320_v46 = vld [vmem:[#allocation12 + $0xe8] sm:$0xff] }
  0x7b   :  { %1881 = vrsqrt.f32 %v181_v47  ;;  %v1710_v47 = vpack.c.bf16 %v302_v44, %v301_v43  ;;  %v1730_v43 = vpack.c.bf16 %v514_v40, %v513_v39  ;;  %v752_v39 = vld [vmem:[#allocation12 + $0x280] sm:$0xff]  ;;  %v753_v40 = vld [vmem:[#allocation12 + $0x288] sm:$0xff] }
  0x84   :  { %v1880_v52 = vpop.eup %1879 }
  0x85   :  { %v1882_v54 = vpop.eup %1881  ;;  %v139_v55 = vmul.f32 %v1880_v52, %v135_v48  ;;  %v140_v56 = vmul.f32 %v1880_v52, %v136_v49  ;;  %v1712_v48 = vpack.c.bf16 %v320_v46, %v319_v45  ;;  %v303_v49 = vld [vmem:[#allocation12 + $0x60] sm:$0xff]  ;;  %v322_v52 = vld [vmem:[#allocation12 + $0xf8] sm:$0xff]  ;;  %v515_v45 = vld [vmem:[#allocation12 + $0x110] sm:$0xff] }
  0x86   :  { %v183_v58 = vmul.f32 %v1882_v54, %v179_v50  ;;  %v184_v59 = vmul.f32 %v1882_v54, %v180_v51  ;;  %v304_v50 = vld [vmem:[#allocation12 + $0x68] sm:$0xff]  ;;  %v321_v51 = vld [vmem:[#allocation12 + $0xf0] sm:$0xff]  ;;  %v516_v46 = vld [vmem:[#allocation12 + $0x118] sm:$0xff] }
  0x87   :  { %v147_v60 = vmul.f32 %v1322_v53, %v139_v55  ;;  %v148_v61 = vmul.f32 %v1322_v53, %v140_v56  ;;  %v1716_v54 = vpack.c.bf16 %v322_v52, %v321_v51  ;;  %v305_v55 = vld [vmem:[#allocation12 + $0x70] sm:$0xff]  ;;  %v306_v56 = vld [vmem:[#allocation12 + $0x78] sm:$0xff]  ;;  %v517_v51 = vld [vmem:[#allocation12 + $0x120] sm:$0xff] }
  0x88   :  { %v185_v62 = vmul.f32 %v1322_v53, %v183_v58  ;;  %v186_v63 = vmul.f32 %v1322_v53, %v184_v59  ;;  %v1714_v53 = vpack.c.bf16 %v304_v50, %v303_v49  ;;  %v1734_v49 = vpack.c.bf16 %v516_v46, %v515_v45  ;;  %v518_v52 = vld [vmem:[#allocation12 + $0x128] sm:$0xff]  ;;  %v738_v46 = vld [vmem:[#allocation12 + $0x210] sm:$0xff] }
  0x89   :  { %v2186_v0 = vadd.f32 %v1323_v57, %v147_v60  ;;  %v2188_v1 = vadd.f32 %v1323_v57, %v148_v61 }
  0x8a   :  { %v2190_v2 = vadd.f32 %v1323_v57, %v185_v62  ;;  %v2192_v3 = vadd.f32 %v1323_v57, %v186_v63  ;;  %v1718_v57 = vpack.c.bf16 %v306_v56, %v305_v55  ;;  %v1328_v63 = vld [vmem:[%s2532_s8] ss:$0 sm:$0xff]  ;;  %v1738_v55 = vpack.c.bf16 %v518_v52, %v517_v51  ;;  %v742_v52 = vld [vmem:[#allocation12 + $0x230] sm:$0xff] }
  0x8b   :  { %v1680_v4 = vpack.c.bf16 %v2188_v1, %v2186_v0 }
  0x8c   :  { %v1684_v5 = vpack.c.bf16 %v2192_v3, %v2190_v2 }
  0x8d   :  { %1681 = vmatprep.subr.bf16.mxu1 %v1680_v4 }
  0x8e   :  { %1683 = vmatpush3.bf16.msra.mxu1 %v1680_v4 }
  0x8f   :  { %1685 = vmatprep.subr.bf16.mxu1 %v1684_v5 }
  0x92   :  { %1687 = vmatpush3.bf16.msra.mxu1 %v1684_v5 }
  0x93   :  { %1689 = vmatprep.subr.bf16.mxu1 %v1688_v8 }
  0x95   :  { %1593 = vmatmul.mubr.msk.f32.vlgmr.msra.gmra.mrb[0].mxu1 %vm193_vm0, %v2201_v14 }
  0x96   :  { %1595 = vmatprep.mubr.msk.f32.mxu1 %vm193_vm0, %v2206_v16  ;;  %1691 = vmatpush3.bf16.msra.mxu1 %v1690_v15 }
  0x97   :  { %1693 = vmatprep.subr.bf16.mxu1 %v1692_v17 }
  0x99   :  { %1596 = vmatmul.mubr.msk.f32.gmra.mrb[2].mxu1 %vm193_vm0, %v2215_v22 }
  0x9a   :  { %1695 = vmatpush3.bf16.msra.mxu1 %v1694_v23 }
  0x9b   :  { %1697 = vmatprep.subr.bf16.mxu1 %v1696_v24 }
  0x9e   :  { %1699 = vmatpush3.bf16.msra.mxu1 %v1698_v29 }
  0x9f   :  { %1701 = vmatprep.subr.bf16.mxu1 %v1700_v30 }
  0xa2   :  { %1703 = vmatpush3.bf16.msra.mxu1 %v1702_v35 }
  0xa3   :  { %1705 = vmatprep.subr.bf16.mxu1 %v1704_v36 }
  0xa6   :  { %1707 = vmatpush3.bf16.msra.mxu1 %v1706_v41  ;;  %v531_v41 = vld [vmem:[#allocation12 + $0x190] sm:$0xff] }
  0xa7   :  { %1709 = vmatprep.subr.bf16.mxu1 %v1708_v42  ;;  %v532_v42 = vld [vmem:[#allocation12 + $0x198] sm:$0xff] }
  0xa8   :  { %v1732_v44 = vpack.c.bf16 %v532_v42, %v531_v41  ;;  %v736_v41 = vld [vmem:[#allocation12 + $0x200] sm:$0xff]  ;;  %v1768_v42 = vpack.c.bf16 %v753_v40, %v752_v39 }
  0xaa   :  { %1711 = vmatpush3.bf16.msra.mxu1 %v1710_v47  ;;  %v533_v47 = vld [vmem:[#allocation12 + $0x1a0] sm:$0xff] }
  0xab   :  { %1713 = vmatprep.subr.bf16.mxu1 %v1712_v48  ;;  %v534_v48 = vld [vmem:[#allocation12 + $0x1a8] sm:$0xff] }
  0xac   :  { %v1736_v50 = vpack.c.bf16 %v534_v48, %v533_v47  ;;  %v757_v47 = vld [vmem:[#allocation12 + $0x2a8] sm:$0xff]  ;;  %v758_v48 = vld [vmem:[#allocation12 + $0x2b0] sm:$0xff] }
  0xae   :  { %1715 = vmatpush3.bf16.msra.mxu1 %v1714_v53  ;;  %v535_v53 = vld [vmem:[#allocation12 + $0x1b0] sm:$0xff] }
  0xaf   :  { %1717 = vmatprep.subr.bf16.mxu1 %v1716_v54  ;;  %v536_v54 = vld [vmem:[#allocation12 + $0x1b8] sm:$0xff] }
  0xb0   :  { %v1740_v56 = vpack.c.bf16 %v536_v54, %v535_v53  ;;  %v743_v53 = vld [vmem:[#allocation12 + $0x238] sm:$0xff]  ;;  %v760_v54 = vld [vmem:[#allocation12 + $0x2c0] sm:$0xff] }
  0xb2   :  { %1719 = vmatpush3.bf16.msra.mxu1 %v1718_v57  ;;  %v519_v57 = vld [vmem:[#allocation12 + $0x130] sm:$0xff] }
 0x168   :  { %v1594_v58 = vpop.f32.mrb[0].mxu1 }
 0x169   :  { %v272_v59 = vpop.f32.mrb[1].mxu1 }
 0x16a   :  { %394 = vmatprep.mubr.f32.mxu1 %v272_v59  ;;  %v537_v59 = vld [vmem:[#allocation12 + $0x1c0] sm:$0xff] }
 0x16b   :  { %395 = vmatmul.mubr.f32.vlgmr.msra.gmra.mrb[4].mxu1 %v2186_v0 }
 0x16c   :  { %399 = vmatprep.mubr.f32.mxu1 %v1594_v58  ;;  %v1597_v60 = vpop.f32.mrb[2].mxu1  ;;  %v520_v58 = vld [vmem:[#allocation12 + $0x138] sm:$0xff] }
 0x16d   :  { %v282_v61 = vpop.f32.mrb[3].mxu1 }
 0x16f   :  { %400 = vmatmul.mubr.f32.gmra.mrb[6].mxu1 %v2188_v1 }
 0x170   :  { %404 = vmatprep.mubr.f32.mxu1 %v282_v61  ;;  %v1742_v61 = vpack.c.bf16 %v520_v58, %v519_v57  ;;  %v744_v58 = vld [vmem:[#allocation12 + $0x240] sm:$0xff] }
 0x173   :  { %405 = vmatmul.mubr.f32.gmra.mrb[8].mxu1 %v2190_v2 }
 0x174   :  { %409 = vmatprep.mubr.f32.mxu1 %v1597_v60  ;;  %v538_v60 = vld [vmem:[#allocation12 + $0x1c8] sm:$0xff] }
 0x177   :  { %410 = vmatmul.mubr.f32.gmra.mrb[10].mxu1 %v2192_v3 }
 0x178   :  { %1620 = vmatprep.mubr.msk.f32.mxu1 %vm193_vm0, %v2177_v10 }
 0x23e   :  { %v1407_v62 = vpop.f32.mrb[4].mxu1 }
 0x23f   :  { %v1408_v4 = vpop.f32.mrb[5].mxu1 }
 0x240   :  { %v1409_v5 = vadd.f32 %v1408_v4, %v1407_v62  ;;  %v1744_v62 = vpack.c.bf16 %v538_v60, %v537_v59  ;;  %v522_v4 = vld [vmem:[#allocation12 + $0x148] sm:$0xff]  ;;  %v762_v60 = vld [vmem:[#allocation12 + $0x2d0] sm:$0xff] }
 0x241   :  { %v745_v59 = vld [vmem:[#allocation12 + $0x248] sm:$0xff] }
 0x242   :  { %v397_v6 = vadd.f32 %v1409_v5, %v1328_v63  ;;  %v1410_v7 = vpop.f32.mrb[6].mxu1  ;;  %v539_v5 = vld [vmem:[#allocation12 + $0x1d0] sm:$0xff] }
 0x243   :  { %v1411_v8 = vpop.f32.mrb[7].mxu1 }
 0x244   :  { %v415_v9 = vmax.f32 %v397_v6, 0.0  ;;  %v1412_v11 = vadd.f32 %v1411_v8, %v1410_v7  ;;  %v540_v6 = vld [vmem:[#allocation12 + $0x1d8] sm:$0xff] }
 0x245   :  { %v1748_v8 = vpack.c.bf16 %v540_v6, %v539_v5  ;;  %v747_v5 = vld [vmem:[#allocation12 + $0x258] sm:$0xff]  ;;  %v764_v6 = vld [vmem:[#allocation12 + $0x2e0] sm:$0xff] }
 0x246   :  { %v402_v12 = vadd.f32 %v1412_v11, %v1328_v63  ;;  %v1413_v13 = vpop.f32.mrb[8].mxu1  ;;  %v2229_v19 = vadd.f32 %v415_v9, %v2186_v0  ;;  %v523_v9 = vld [vmem:[#allocation12 + $0x150] sm:$0xff]  ;;  %v524_v11 = vld [vmem:[#allocation12 + $0x158] sm:$0xff] }
 0x247   :  { %v1414_v15 = vpop.f32.mrb[9].mxu1 }
 0x248   :  { %v416_v17 = vmax.f32 %v402_v12, 0.0  ;;  %v1415_v18 = vadd.f32 %v1414_v15, %v1413_v13  ;;  %v423_v26 = vmax.f32 %v2229_v19, 0.0  ;;  %v541_v12 = vld [vmem:[#allocation12 + $0x1e0] sm:$0xff]  ;;  %v542_v13 = vld [vmem:[#allocation12 + $0x1e8] sm:$0xff]  ;;  %v1750_v15 = vpack.c.bf16 %v524_v11, %v523_v9 }
 0x249   :  { %v737_v19 = vld [vmem:[#allocation12 + $0x208] sm:$0xff]  ;;  %v748_v11 = vld [vmem:[#allocation12 + $0x260] sm:$0xff] }
 0x24a   :  { %v407_v10 = vadd.f32 %v1415_v18, %v1328_v63  ;;  %v1416_v20 = vpop.f32.mrb[10].mxu1  ;;  %v2232_v21 = vadd.f32 %v416_v17, %v2188_v1  ;;  %v1752_v17 = vpack.c.bf16 %v542_v13, %v541_v12  ;;  %v525_v18 = vld [vmem:[#allocation12 + $0x160] sm:$0xff]  ;;  %v749_v12 = vld [vmem:[#allocation12 + $0x268] sm:$0xff]  ;;  %v766_v13 = vld [vmem:[#allocation12 + $0x2f0] sm:$0xff] }
 0x24b   :  { %v1417_v23 = vpop.f32.mrb[11].mxu1 }
 0x24c   :  { %v417_v24 = vmax.f32 %v407_v10, 0.0  ;;  %v1418_v25 = vadd.f32 %v1417_v23, %v1416_v20  ;;  %v424_v27 = vmax.f32 %v2232_v21, 0.0  ;;  %v526_v10 = vld [vmem:[#allocation12 + $0x168] sm:$0xff]  ;;  %v543_v20 = vld [vmem:[#allocation12 + $0x1f0] sm:$0xff]  ;;  %v544_v23 = vld [vmem:[#allocation12 + $0x1f8] sm:$0xff] }
 0x24d   :  { %v739_v21 = vld [vmem:[#allocation12 + $0x218] sm:$0xff] }
 0x24e   :  { %v412_v28 = vadd.f32 %v1418_v25, %v1328_v63  ;;  %v1720_v29 = vpack.c.bf16 %v424_v27, %v423_v26  ;;  %v2241_v30 = vadd.f32 %v417_v24, %v2190_v2  ;;  %v521_v63 = vld [vmem:[#allocation12 + $0x140] sm:$0xff]  ;;  %v1754_v24 = vpack.c.bf16 %v526_v10, %v525_v18 }
 0x24f   :  { %v1746_v7 = vpack.c.bf16 %v522_v4, %v521_v63  ;;  %v1756_v25 = vpack.c.bf16 %v544_v23, %v543_v20  ;;  %v746_v4 = vld [vmem:[#allocation12 + $0x250] sm:$0xff]  ;;  %v1334_v20 = vld [vmem:[%s2532_s8 + $0x1] ss:$0 sm:$0xff] }
 0x250   :  { %v418_v31 = vmax.f32 %v412_v28, 0.0  ;;  %1721 = vmatprep.subr.bf16.mxu0 %v1720_v29  ;;  %v425_v35 = vmax.f32 %v2241_v30, 0.0  ;;  %v527_v28 = vld [vmem:[#allocation12 + $0x170] sm:$0xff]  ;;  %v1774_v30 = vpack.c.bf16 %v739_v21, %v738_v46 }
 0x251   :  { %1723 = vmatpush3.bf16.msra.mxu0 %v1720_v29  ;;  %v528_v29 = vld [vmem:[#allocation12 + $0x178] sm:$0xff] }
 0x252   :  { %v2244_v32 = vadd.f32 %v418_v31, %v2192_v3  ;;  %v1758_v31 = vpack.c.bf16 %v528_v29, %v527_v28 }
 0x254   :  { %v426_v36 = vmax.f32 %v2244_v32, 0.0  ;;  %v740_v32 = vld [vmem:[#allocation12 + $0x220] sm:$0xff] }
 0x256   :  { %v1724_v37 = vpack.c.bf16 %v426_v36, %v425_v35 }
 0x258   :  { %1725 = vmatprep.subr.bf16.mxu0 %v1724_v37 }
 0x259   :  { %1727 = vmatpush3.bf16.msra.mxu0 %v1724_v37 }
 0x25a   :  { %1729 = vmatprep.subr.bf16.mxu0 %v1728_v38 }
 0x25c   :  { %1607 = vmatmul.mubr.msk.f32.vlgmr.msra.gmra.mrb[0].mxu0 %vm193_vm0, %v2201_v14 }
 0x25d   :  { %1609 = vmatprep.mubr.msk.f32.mxu0 %vm193_vm0, %v2206_v16  ;;  %1731 = vmatpush3.bf16.msra.mxu0 %v1730_v43  ;;  %v755_v43 = vld [vmem:[#allocation12 + $0x298] sm:$0xff] }
 0x25e   :  { %1733 = vmatprep.subr.bf16.mxu0 %v1732_v44  ;;  %v1770_v44 = vpack.c.bf16 %v737_v19, %v736_v41 }
 0x260   :  { %1610 = vmatmul.mubr.msk.f32.gmra.mrb[2].mxu0 %vm193_vm0, %v2215_v22 }
 0x261   :  { %1735 = vmatpush3.bf16.msra.mxu0 %v1734_v49  ;;  %v759_v49 = vld [vmem:[#allocation12 + $0x2b8] sm:$0xff] }
 0x262   :  { %1737 = vmatprep.subr.bf16.mxu0 %v1736_v50  ;;  %v1780_v51 = vpack.c.bf16 %v759_v49, %v758_v48 }
 0x265   :  { %1739 = vmatpush3.bf16.msra.mxu0 %v1738_v55  ;;  %v761_v55 = vld [vmem:[#allocation12 + $0x2c8] sm:$0xff] }
 0x266   :  { %1741 = vmatprep.subr.bf16.mxu0 %v1740_v56  ;;  %v1782_v56 = vpack.c.bf16 %v743_v53, %v742_v52  ;;  %v1784_v57 = vpack.c.bf16 %v761_v55, %v760_v54 }
 0x269   :  { %1743 = vmatpush3.bf16.msra.mxu0 %v1742_v61  ;;  %v763_v61 = vld [vmem:[#allocation12 + $0x2d8] sm:$0xff] }
 0x26a   :  { %1745 = vmatprep.subr.bf16.mxu0 %v1744_v62  ;;  %v1786_v62 = vpack.c.bf16 %v745_v59, %v744_v58  ;;  %v1788_v63 = vpack.c.bf16 %v763_v61, %v762_v60  ;;  %v997_v58 = vld [vmem:[%s2533_s9 + $0x8] sm:$0xff]  ;;  %v1014_v60 = vld [vmem:[%s2533_s9 + $0x90] sm:$0xff]  ;;  %v1015_v61 = vld [vmem:[%s2533_s9 + $0x98] sm:$0xff] }
 0x26d   :  { %1747 = vmatpush3.bf16.msra.mxu0 %v1746_v7  ;;  %v765_v7 = vld [vmem:[#allocation12 + $0x2e8] sm:$0xff] }
 0x26e   :  { %1749 = vmatprep.subr.bf16.mxu0 %v1748_v8  ;;  %v1790_v8 = vpack.c.bf16 %v747_v5, %v746_v4  ;;  %v1792_v9 = vpack.c.bf16 %v765_v7, %v764_v6  ;;  %v999_v4 = vld [vmem:[%s2533_s9 + $0x18] sm:$0xff]  ;;  %v1016_v6 = vld [vmem:[%s2533_s9 + $0xa0] sm:$0xff]  ;;  %v1017_v7 = vld [vmem:[%s2533_s9 + $0xa8] sm:$0xff] }
 0x271   :  { %1751 = vmatpush3.bf16.msra.mxu0 %v1750_v15  ;;  %v767_v15 = vld [vmem:[#allocation12 + $0x2f8] sm:$0xff] }
 0x272   :  { %1753 = vmatprep.subr.bf16.mxu0 %v1752_v17  ;;  %v1794_v17 = vpack.c.bf16 %v749_v12, %v748_v11  ;;  %v1796_v18 = vpack.c.bf16 %v767_v15, %v766_v13  ;;  %v1001_v11 = vld [vmem:[%s2533_s9 + $0x28] sm:$0xff]  ;;  %v1018_v13 = vld [vmem:[%s2533_s9 + $0xb0] sm:$0xff]  ;;  %v1019_v15 = vld [vmem:[%s2533_s9 + $0xb8] sm:$0xff] }
 0x275   :  { %1755 = vmatpush3.bf16.msra.mxu0 %v1754_v24 }
 0x276   :  { %1757 = vmatprep.subr.bf16.mxu0 %v1756_v25 }
 0x279   :  { %1759 = vmatpush3.bf16.msra.mxu0 %v1758_v31 }
 0x27a   :  { %1769 = vmatprep.subr.bf16.mxu0 %v1768_v42 }
 0x32f   :  { %v1608_v33 = vpop.f32.mrb[0].mxu0 }
 0x330   :  { %v493_v34 = vpop.f32.mrb[1].mxu0 }
 0x331   :  { %617 = vmatprep.mubr.f32.mxu0 %v493_v34 }
 0x332   :  { %618 = vmatmul.mubr.f32.vlgmr.msra.gmra.mrb[4].mxu0 %v423_v26  ;;  %v754_v26 = vld [vmem:[#allocation12 + $0x290] sm:$0xff] }
 0x333   :  { %622 = vmatprep.mubr.f32.mxu0 %v1608_v33  ;;  %v1611_v37 = vpop.f32.mrb[2].mxu0  ;;  %v1772_v45 = vpack.c.bf16 %v755_v43, %v754_v26  ;;  %1771 = vmatpush3.bf16.msra.mxu0 %v1770_v44 }
 0x334   :  { %v503_v38 = vpop.f32.mrb[3].mxu0 }
 0x335   :  { %1773 = vmatprep.subr.bf16.mxu0 %v1772_v45 }
 0x336   :  { %623 = vmatmul.mubr.f32.gmra.mrb[6].mxu0 %v424_v27  ;;  %v756_v27 = vld [vmem:[#allocation12 + $0x2a0] sm:$0xff] }
 0x337   :  { %627 = vmatprep.mubr.f32.mxu0 %v503_v38  ;;  %1775 = vmatpush3.bf16.msra.mxu0 %v1774_v30 }
 0x33a   :  { %628 = vmatmul.mubr.f32.gmra.mrb[8].mxu0 %v425_v35  ;;  %v1776_v35 = vpack.c.bf16 %v757_v47, %v756_v27 }
 0x33b   :  { %632 = vmatprep.mubr.f32.mxu0 %v1611_v37 }
 0x33c   :  { %1777 = vmatprep.subr.bf16.mxu0 %v1776_v35 }
 0x33e   :  { %633 = vmatmul.mubr.f32.gmra.mrb[10].mxu0 %v426_v36  ;;  %v741_v36 = vld [vmem:[#allocation12 + $0x228] sm:$0xff] }
 0x33f   :  { %v1778_v50 = vpack.c.bf16 %v741_v36, %v740_v32 }
 0x341   :  { %1779 = vmatpush3.bf16.msra.mxu0 %v1778_v50  ;;  %v750_v50 = vld [vmem:[#allocation12 + $0x270] sm:$0xff] }
 0x342   :  { %1781 = vmatprep.subr.bf16.mxu0 %v1780_v51  ;;  %v751_v51 = vld [vmem:[#allocation12 + $0x278] sm:$0xff] }
 0x343   :  { %v1798_v52 = vpack.c.bf16 %v751_v51, %v750_v50  ;;  %v1109_v50 = vld [vmem:[%s2535_s11 + $0x18] sm:$0xff] }
 0x345   :  { %1783 = vmatpush3.bf16.msra.mxu0 %v1782_v56 }
 0x346   :  { %1785 = vmatprep.subr.bf16.mxu0 %v1784_v57  ;;  %v996_v57 = vld [vmem:[%s2533_s9] sm:$0xff] }
 0x347   :  { %v1802_v59 = vpack.c.bf16 %v997_v58, %v996_v57  ;;  %v1116_v58 = vld [vmem:[%s2535_s11 + $0x50] sm:$0xff] }
 0x349   :  { %1787 = vmatpush3.bf16.msra.mxu0 %v1786_v62  ;;  %v1804_v62 = vpack.c.bf16 %v1015_v61, %v1014_v60 }
 0x34a   :  { %1789 = vmatprep.subr.bf16.mxu0 %v1788_v63  ;;  %v998_v63 = vld [vmem:[%s2533_s9 + $0x10] sm:$0xff] }
 0x34b   :  { %v1806_v5 = vpack.c.bf16 %v999_v4, %v998_v63 }
 0x34d   :  { %1791 = vmatpush3.bf16.msra.mxu0 %v1790_v8  ;;  %v1808_v8 = vpack.c.bf16 %v1017_v7, %v1016_v6 }
 0x34e   :  { %1793 = vmatprep.subr.bf16.mxu0 %v1792_v9  ;;  %v1000_v9 = vld [vmem:[%s2533_s9 + $0x20] sm:$0xff] }
 0x34f   :  { %v1810_v12 = vpack.c.bf16 %v1001_v11, %v1000_v9 }
 0x351   :  { %1795 = vmatpush3.bf16.msra.mxu0 %v1794_v17  ;;  %v1812_v17 = vpack.c.bf16 %v1019_v15, %v1018_v13 }
 0x352   :  { %1797 = vmatprep.subr.bf16.mxu0 %v1796_v18  ;;  %v1002_v18 = vld [vmem:[%s2533_s9 + $0x30] sm:$0xff] }
 0x355   :  { %1799 = vmatpush3.bf16.msra.mxu0 %v1798_v52  ;;  %v1110_v52 = vld [vmem:[%s2535_s11 + $0x20] sm:$0xff] }
 0x405   :  { %v1459_v10 = vpop.f32.mrb[4].mxu0 }
 0x406   :  { %v1460_v23 = vpop.f32.mrb[5].mxu0 }
 0x407   :  { %v1461_v24 = vadd.f32 %v1460_v23, %v1459_v10  ;;  %v1003_v10 = vld [vmem:[%s2533_s9 + $0x38] sm:$0xff]  ;;  %v1020_v23 = vld [vmem:[%s2533_s9 + $0xc0] sm:$0xff] }
 0x409   :  { %v620_v25 = vadd.f32 %v1461_v24, %v1334_v20  ;;  %v1462_v28 = vpop.f32.mrb[6].mxu0  ;;  %v1021_v24 = vld [vmem:[%s2533_s9 + $0xc8] sm:$0xff] }
 0x40a   :  { %v1463_v29 = vpop.f32.mrb[7].mxu0 }
 0x40b   :  { %v638_v31 = vmax.f32 %v620_v25, 0.0  ;;  %v1464_v33 = vadd.f32 %v1463_v29, %v1462_v28  ;;  %v1816_v25 = vpack.c.bf16 %v1021_v24, %v1020_v23  ;;  %v1004_v28 = vld [vmem:[%s2533_s9 + $0x40] sm:$0xff]  ;;  %v1005_v29 = vld [vmem:[%s2533_s9 + $0x48] sm:$0xff] }
 0x40d   :  { %v625_v34 = vadd.f32 %v1464_v33, %v1334_v20  ;;  %v1465_v37 = vpop.f32.mrb[8].mxu0  ;;  %v642_v39 = vadd.f32 %v638_v31, %v2186_v0  ;;  %v1022_v31 = vld [vmem:[%s2533_s9 + $0xd0] sm:$0xff]  ;;  %v1818_v33 = vpack.c.bf16 %v1005_v29, %v1004_v28 }
 0x40e   :  { %v1466_v38 = vpop.f32.mrb[9].mxu0 }
 0x40f   :  { %v639_v40 = vmax.f32 %v625_v34, 0.0  ;;  %v1467_v41 = vadd.f32 %v1466_v38, %v1465_v37  ;;  %v646_v44 = vmax.f32 %v642_v39, 0.0  ;;  %v1023_v34 = vld [vmem:[%s2533_s9 + $0xd8] sm:$0xff]  ;;  %v1006_v37 = vld [vmem:[%s2533_s9 + $0x50] sm:$0xff] }
 0x410   :  { %v1007_v38 = vld [vmem:[%s2533_s9 + $0x58] sm:$0xff]  ;;  %v1820_v39 = vpack.c.bf16 %v1023_v34, %v1022_v31 }
 0x411   :  { %v643_v42 = vadd.f32 %v639_v40, %v2188_v1  ;;  %v630_v19 = vadd.f32 %v1467_v41, %v1334_v20  ;;  %v1468_v26 = vpop.f32.mrb[10].mxu0  ;;  %v1024_v40 = vld [vmem:[%s2533_s9 + $0xe0] sm:$0xff]  ;;  %v1025_v41 = vld [vmem:[%s2533_s9 + $0xe8] sm:$0xff] }
 0x412   :  { %v1469_v43 = vpop.f32.mrb[11].mxu0 }
 0x413   :  { %v647_v45 = vmax.f32 %v643_v42, 0.0  ;;  %v640_v46 = vmax.f32 %v630_v19, 0.0  ;;  %v1470_v21 = vadd.f32 %v1469_v43, %v1468_v26  ;;  %v1822_v42 = vpack.c.bf16 %v1007_v38, %v1006_v37  ;;  %v1008_v26 = vld [vmem:[%s2533_s9 + $0x60] sm:$0xff]  ;;  %v1009_v43 = vld [vmem:[%s2533_s9 + $0x68] sm:$0xff] }
 0x414   :  { %v1824_v19 = vpack.c.bf16 %v1025_v41, %v1024_v40 }
 0x415   :  { %v635_v27 = vadd.f32 %v1470_v21, %v1334_v20  ;;  %v1760_v47 = vpack.c.bf16 %v647_v45, %v646_v44  ;;  %v644_v30 = vadd.f32 %v640_v46, %v2190_v2  ;;  %v1814_v20 = vpack.c.bf16 %v1003_v10, %v1002_v18 }
 0x416   :  { %v1826_v46 = vpack.c.bf16 %v1009_v43, %v1008_v26 }
 0x417   :  { %v641_v35 = vmax.f32 %v635_v27, 0.0  ;;  %1761 = vmatprep.subr.bf16.mxu1 %v1760_v47  ;;  %v648_v36 = vmax.f32 %v644_v30, 0.0  ;;  %v1010_v27 = vld [vmem:[%s2533_s9 + $0x70] sm:$0xff] }
 0x418   :  { %1763 = vmatpush3.bf16.msra.mxu1 %v1760_v47  ;;  %v1011_v47 = vld [vmem:[%s2533_s9 + $0x78] sm:$0xff] }
 0x419   :  { %v645_v32 = vadd.f32 %v641_v35, %v2192_v3  ;;  %v1830_v30 = vpack.c.bf16 %v1011_v47, %v1010_v27  ;;  %v1106_v35 = vld [vmem:[%s2535_s11] sm:$0xff] }
 0x41b   :  { %v649_v48 = vmax.f32 %v645_v32, 0.0  ;;  %v1107_v32 = vld [vmem:[%s2535_s11 + $0x8] sm:$0xff] }
 0x41d   :  { %v1764_v49 = vpack.c.bf16 %v649_v48, %v648_v36 }
 0x41f   :  { %1765 = vmatprep.subr.bf16.mxu1 %v1764_v49 }
 0x420   :  { %1767 = vmatpush3.bf16.msra.mxu1 %v1764_v49  ;;  %v1833_v49 = vpack.c.bf16 %v1107_v32, %v1106_v35 }
 0x423   :  { %1621 = vmatmul.mubr.msk.f32.vlgmr.msra.gmra.mrb[12].mxu1 %vm193_vm0, %v2201_v14  ;;  %v1012_v14 = vld [vmem:[%s2533_s9 + $0x80] sm:$0xff] }
 0x424   :  { %1623 = vmatprep.mubr.msk.f32.mxu1 %vm193_vm0, %v2206_v16  ;;  %v1013_v16 = vld [vmem:[%s2533_s9 + $0x88] sm:$0xff] }
 0x427   :  { %1624 = vmatmul.mubr.msk.f32.gmra.mrb[14].mxu1 %vm193_vm0, %v2215_v22  ;;  %v1800_v22 = vpack.c.bf16 %v1013_v16, %v1012_v14  ;;  %v1114_v16 = vld [vmem:[%s2535_s11 + $0x40] sm:$0xff] }
 0x429   :  { %1801 = vmatprep.subr.bf16.mxu1 %v1800_v22  ;;  %v1115_v22 = vld [vmem:[%s2535_s11 + $0x48] sm:$0xff] }
 0x42a   :  { %1803 = vmatpush3.bf16.msra.mxu1 %v1802_v59  ;;  %v1845_v57 = vpack.c.bf16 %v1115_v22, %v1114_v16  ;;  %v1117_v59 = vld [vmem:[%s2535_s11 + $0x58] sm:$0xff] }
 0x42b   :  { %1805 = vmatprep.subr.bf16.mxu1 %v1804_v62  ;;  %v1848_v60 = vpack.c.bf16 %v1117_v59, %v1116_v58  ;;  %v1340_v62 = vld [vmem:[%s2532_s8 + $0x2] ss:$0 sm:$0xff]  ;;  %s2425_s8 = sld [smem:[#allocation5]] }
 0x42e   :  { %1807 = vmatpush3.bf16.msra.mxu1 %v1806_v5 }
 0x42f   :  { %1809 = vmatprep.subr.bf16.mxu1 %v1808_v8 }
 0x431   :  { %s1306_s21 = scalar_lea.vmem [#allocation2], %s2425_s8  ;;  %s890_s8 = scalar_lea.vmem [#allocation2], %s2442_s27 }
 0x432   :  { %1811 = vmatpush3.bf16.msra.mxu1 %v1810_v12 }
 0x433   :  { %1813 = vmatprep.subr.bf16.mxu1 %v1812_v17 }
 0x436   :  { %1815 = vmatpush3.bf16.msra.mxu1 %v1814_v20 }
 0x437   :  { %1817 = vmatprep.subr.bf16.mxu1 %v1816_v25 }
 0x43a   :  { %1819 = vmatpush3.bf16.msra.mxu1 %v1818_v33 }
 0x43b   :  { %1821 = vmatprep.subr.bf16.mxu1 %v1820_v39 }
 0x43e   :  { %1823 = vmatpush3.bf16.msra.mxu1 %v1822_v42 }
 0x43f   :  { %1825 = vmatprep.subr.bf16.mxu1 %v1824_v19 }
 0x442   :  { %1827 = vmatpush3.bf16.msra.mxu1 %v1826_v46 }
 0x4f6   :  { %v1622_v53 = vpop.f32.mrb[12].mxu1 }
 0x4f7   :  { %v716_v54 = vpop.f32.mrb[13].mxu1 }
 0x4f8   :  { %840 = vmatprep.mubr.f32.mxu0 %v716_v54 }
 0x4f9   :  { %841 = vmatmul.mubr.f32.vlgmr.msra.gmra.mrb[12].mxu0 %v646_v44  ;;  %v1026_v44 = vld [vmem:[%s2533_s9 + $0xf0] sm:$0xff] }
 0x4fa   :  { %845 = vmatprep.mubr.f32.mxu0 %v1622_v53  ;;  %v1625_v55 = vpop.f32.mrb[14].mxu1  ;;  %v1111_v53 = vld [vmem:[%s2535_s11 + $0x28] sm:$0xff] }
 0x4fb   :  { %v726_v56 = vpop.f32.mrb[15].mxu1  ;;  %v1839_v54 = vpack.c.bf16 %v1111_v53, %v1110_v52 }
 0x4fd   :  { %846 = vmatmul.mubr.f32.gmra.mrb[14].mxu0 %v647_v45  ;;  %v1027_v45 = vld [vmem:[%s2533_s9 + $0xf8] sm:$0xff]  ;;  %s2432_s9 = sld [smem:[#allocation5 + $0x7]] }
 0x4fe   :  { %850 = vmatprep.mubr.f32.mxu0 %v726_v56  ;;  %v1828_v21 = vpack.c.bf16 %v1027_v45, %v1026_v44  ;;  %v1113_v56 = vld [vmem:[%s2535_s11 + $0x38] sm:$0xff] }
 0x500   :  { %1829 = vmatprep.subr.bf16.mxu1 %v1828_v21 }
 0x501   :  { %851 = vmatmul.mubr.f32.gmra.mrb[16].mxu0 %v648_v36  ;;  %1831 = vmatpush3.bf16.msra.mxu1 %v1830_v30  ;;  %v1108_v36 = vld [vmem:[%s2535_s11 + $0x10] sm:$0xff] }
 0x502   :  { %855 = vmatprep.mubr.f32.mxu0 %v1625_v55  ;;  %v1836_v51 = vpack.c.bf16 %v1109_v50, %v1108_v36  ;;  %v1112_v55 = vld [vmem:[%s2535_s11 + $0x30] sm:$0xff] }
 0x503   :  { %v1842_v14 = vpack.c.bf16 %v1113_v56, %v1112_v55  ;;  %s1320_s26 = scalar_lea.vmem [#allocation2], %s2432_s9 }
 0x505   :  { %856 = vmatmul.mubr.f32.gmra.mrb[18].mxu0 %v649_v48  ;;  %v2011_v48 = vmov 0.0|0.0  }
 0x506   :  { %1832 = vmatprep.subr.bf16.mxu0 %v2011_v48  ;;  %1856 = vmatprep.subr.bf16.mxu1 %v2011_v48 }
 0x507   :  { %1834 = vmatpush3.bf16.msra.mxu0 %v1833_v49 }
 0x508   :  { %1835 = vmatprep.subr.bf16.mxu0 %v2011_v48 }
 0x50b   :  { %1837 = vmatpush3.bf16.msra.mxu0 %v1836_v51 }
 0x50c   :  { %1838 = vmatprep.subr.bf16.mxu0 %v2011_v48 }
 0x50f   :  { %1840 = vmatpush3.bf16.msra.mxu0 %v1839_v54 }
 0x510   :  { %1841 = vmatprep.subr.bf16.mxu0 %v2011_v48 }
 0x513   :  { %1843 = vmatpush3.bf16.msra.mxu0 %v1842_v14 }
 0x514   :  { %1844 = vmatprep.subr.bf16.mxu0 %v2011_v48 }
 0x517   :  { %1846 = vmatpush3.bf16.msra.mxu0 %v1845_v57 }
 0x518   :  { %1847 = vmatprep.subr.bf16.mxu0 %v2011_v48 }
 0x51b   :  { %1849 = vmatpush3.bf16.msra.mxu0 %v1848_v60 }
 0x51c   :  { %1850 = vmatprep.subr.bf16.mxu0 %v2011_v48 }
 0x5cc   :  { %v1511_v61 = vpop.f32.mrb[12].mxu0 }
 0x5cd   :  { %v1512_v63 = vpop.f32.mrb[13].mxu0 }
 0x5ce   :  { %v1513_v4 = vadd.f32 %v1512_v63, %v1511_v61 }
 0x5d0   :  { %v843_v5 = vadd.f32 %v1513_v4, %v1340_v62  ;;  %v1514_v6 = vpop.f32.mrb[14].mxu0 }
 0x5d1   :  { %v1515_v7 = vpop.f32.mrb[15].mxu0 }
 0x5d2   :  { %v861_v8 = vmax.f32 %v843_v5, 0.0  ;;  %v1516_v9 = vadd.f32 %v1515_v7, %v1514_v6 }
 0x5d4   :  { %v865_v11 = vadd.f32 %v861_v8, %v2186_v0  ;;  %v848_v12 = vadd.f32 %v1516_v9, %v1340_v62  ;;  %v1517_v13 = vpop.f32.mrb[16].mxu0 }
 0x5d5   :  { %v1518_v15 = vpop.f32.mrb[17].mxu0 }
 0x5d6   :  { %v869_v17 = vmax.f32 %v865_v11, 0.0  ;;  %v862_v18 = vmax.f32 %v848_v12, 0.0  ;;  %v1519_v10 = vadd.f32 %v1518_v15, %v1517_v13  ;;  %v1118_v12 = vld [vmem:[%s2535_s11 + $0x60] sm:$0xff]  ;;  %v1119_v13 = vld [vmem:[%s2535_s11 + $0x68] sm:$0xff] }
 0x5d7   :  { %v1851_v15 = vpack.c.bf16 %v1119_v13, %v1118_v12 }
 0x5d8   :  { %873 = vst [vmem:[#allocation2] sm:$0xff] %v869_v17  ;;  %v866_v20 = vadd.f32 %v862_v18, %v2188_v1  ;;  %v853_v23 = vadd.f32 %v1519_v10, %v1340_v62  ;;  %v1520_v24 = vpop.f32.mrb[18].mxu0  ;;  %v1120_v17 = vld [vmem:[%s2535_s11 + $0x70] sm:$0xff]  ;;  %v1121_v18 = vld [vmem:[%s2535_s11 + $0x78] sm:$0xff] }
 0x5d9   :  { %v1521_v25 = vpop.f32.mrb[19].mxu0  ;;  %1852 = vmatpush3.bf16.msra.mxu0 %v1851_v15  ;;  %v1854_v10 = vpack.c.bf16 %v1121_v18, %v1120_v17 }
 0x5da   :  { %v870_v28 = vmax.f32 %v866_v20, 0.0  ;;  %v863_v29 = vmax.f32 %v853_v23, 0.0  ;;  %v1522_v31 = vadd.f32 %v1521_v25, %v1520_v24  ;;  %1853 = vmatprep.subr.bf16.mxu0 %v2011_v48  ;;  %v2013_v20 = vmov 0.0   ;;  %v1200_v23 = vld [vmem:[%s2537_s13] sm:$0xff]  ;;  %v1201_v24 = vld [vmem:[%s2537_s13 + $0x8] sm:$0xff]  ;;  %v1202_v25 = vld [vmem:[%s2537_s13 + $0x10] sm:$0xff] }
 0x5db   :  { %1658 = vmatprep.mubr.msk.f32.mxu0 %vm2012_vm8, %v2013_v20 }
 0x5dc   :  { %874 = vst [vmem:[#allocation2 + $0x8] sm:$0xff] %v870_v28  ;;  %v867_v33 = vadd.f32 %v863_v29, %v2190_v2  ;;  %v858_v34 = vadd.f32 %v1522_v31, %v1340_v62  ;;  %v1857_v28 = vpack.c.bf16 %v1201_v24, %v1200_v23  ;;  %v1203_v29 = vld [vmem:[%s2537_s13 + $0x18] sm:$0xff] }
 0x5dd   :  { %1855 = vmatpush3.bf16.msra.mxu0 %v1854_v10  ;;  %v1860_v31 = vpack.c.bf16 %v1203_v29, %v1202_v25 }
 0x5de   :  { %v871_v0 = vmax.f32 %v867_v33, 0.0  ;;  %v864_v37 = vmax.f32 %v858_v34, 0.0  ;;  %v1204_v33 = vld [vmem:[%s2537_s13 + $0x20] sm:$0xff]  ;;  %v1205_v34 = vld [vmem:[%s2537_s13 + $0x28] sm:$0xff] }
 0x5e0   :  { %875 = vst [vmem:[#allocation2 + $0x10] sm:$0xff] %v871_v0  ;;  %v868_v38 = vadd.f32 %v864_v37, %v2192_v3  ;;  %v1863_v0 = vpack.c.bf16 %v1205_v34, %v1204_v33 }
 0x5e2   :  { %v872_v1 = vmax.f32 %v868_v38, 0.0  ;;  %v1363_v38 = vld [vmem:[%s2534_s10] ss:$0 sm:$0xff] }
 0x5e4   :  { %876 = vst [vmem:[#allocation2 + $0x18] sm:$0xff] %v872_v1 }
 0x5eb   :  { %v1350_v2 = vld [vmem:[%s1308_s3 + $0x10] sm:$0x1]  ;;  %v882_v46 = vld [vmem:[%s881_s18] sm:$0x1] }
 0x5ec   :  { %v1352_v3 = vld [vmem:[%s1310_s14 + $0x10] sm:$0x1]  ;;  %v969_v41 = vrot.slane %v1350_v2, 7  ;;  %v885_v21 = vld [vmem:[%s884_s25] sm:$0x1]  ;;  %v934_v50 = vrot.slane %v882_v46, 7 }
 0x5ed   :  { %v1354_v39 = vld [vmem:[%s1312_s17 + $0x10] sm:$0x1]  ;;  %v972_v42 = vrot.slane %v1352_v3, 6  ;;  %v888_v35 = vld [vmem:[%s887_s7] sm:$0x1]  ;;  %v937_v51 = vrot.slane %v885_v21, 6 }
 0x5ee   :  { %v1356_v40 = vld [vmem:[%s1314_s19 + $0x10] sm:$0x1]  ;;  %v975_v44 = vrot.slane %v1354_v39, 5  ;;  %v891_v49 = vld [vmem:[%s890_s8] sm:$0x1]  ;;  %v940_v22 = vrot.slane %v888_v35, 5 }
 0x5ef   :  { %v1348_v19 = vld [vmem:[%s1306_s21 + $0x10] sm:$0x1]  ;;  %v978_v47 = vrot.slane %v1356_v40, 4  ;;  %v879_v54 = vld [vmem:[%s878_s22] sm:$0x1]  ;;  %v943_v60 = vrot.slane %v891_v49, 4 }
 0x5f0   :  { %v1358_v26 = vld [vmem:[%s1316_s24 + $0x10] sm:$0x1]  ;;  %v989_v45 = vsel %vm954_vm1, %v1348_v19, %v969_v41  ;;  %v894_v55 = vld [vmem:[%s893_s4] sm:$0x1]  ;;  %v955_v57 = vsel %vm954_vm1, %v879_v54, %v934_v50  ;;  %v1207_v41 = vld [vmem:[%s2537_s13 + $0x38] sm:$0xff] }
 0x5f1   :  { %v1360_v43 = vld [vmem:[%s1318_s5 + $0x10] sm:$0x1]  ;;  %v990_v30 = vsel %vm956_vm2, %v989_v45, %v972_v42  ;;  %v981_v32 = vrot.slane %v1358_v26, 3  ;;  %v897_v16 = vld [vmem:[%s896_s23] sm:$0x1]  ;;  %v957_v61 = vsel %vm956_vm2, %v955_v57, %v937_v51  ;;  %v946_v63 = vrot.slane %v894_v55, 3 }
 0x5f2   :  { %v1362_v27 = vld [vmem:[%s1320_s26 + $0x10] sm:$0x1]  ;;  %v991_v36 = vsel %vm958_vm3, %v990_v30, %v975_v44  ;;  %v984_v52 = vrot.slane %v1360_v43, 2  ;;  %v900_v59 = vld [vmem:[%s899_s20] sm:$0x1]  ;;  %v959_v4 = vsel %vm958_vm3, %v957_v61, %v940_v22  ;;  %v949_v5 = vrot.slane %v897_v16, 2 }
 0x5f3   :  { %v992_v53 = vsel %vm960_vm4, %v991_v36, %v978_v47  ;;  %v987_v56 = vrot.slane %v1362_v27, 1  ;;  %v961_v6 = vsel %vm960_vm4, %v959_v4, %v943_v60  ;;  %v952_v7 = vrot.slane %v900_v59, 1  ;;  %v1206_v40 = vld [vmem:[%s2537_s13 + $0x30] sm:$0xff]  ;;  %v1365_v45 = vld [vmem:[#allocation6] ss:$0 sm:$0xff] }
 0x5f4   :  { %v993_v14 = vsel %vm962_vm5, %v992_v53, %v981_v32  ;;  %v963_v8 = vsel %vm962_vm5, %v961_v6, %v946_v63  ;;  %v1866_v42 = vpack.c.bf16 %v1207_v41, %v1206_v40 }
 0x5f5   :  { %v994_v58 = vsel %vm964_vm6, %v993_v14, %v984_v52  ;;  %v965_v9 = vsel %vm964_vm6, %v963_v8, %v949_v5 }
 0x5f6   :  { %v995_v62 = vsel %vm966_vm7, %v994_v58, %v987_v56  ;;  %v967_v11 = vsel %vm966_vm7, %v965_v9, %v952_v7 }
 0x5f7   :  { %1099 = vmatprep.mubr.f32.mxu1 %v995_v62 }
 0x5f8   :  { %1100 = vmatmul.mubr.f32.vlgmr.msra.gmra.mrb[16].mxu1 %v967_v11 }
 0x5f9   :  { %1677 = vmatprep.mubr.msk.f32.mxu1 %vm2012_vm8, %v2013_v20  ;;  %1858 = vmatpush3.bf16.msra.mxu1 %v1857_v28 }
 0x5fa   :  { %1859 = vmatprep.subr.bf16.mxu1 %v2011_v48 }
 0x5fd   :  { %1861 = vmatpush3.bf16.msra.mxu1 %v1860_v31 }
 0x5fe   :  { %1862 = vmatprep.subr.bf16.mxu1 %v2011_v48 }
 0x601   :  { %1864 = vmatpush3.bf16.msra.mxu1 %v1863_v0 }
 0x602   :  { %1865 = vmatprep.subr.bf16.mxu1 %v2011_v48  ;;  %v1364_v48 = vld [vmem:[%s2542_s0] ss:$0 sm:$0xff] }
 0x605   :  { %1867 = vmatpush3.bf16.msra.mxu1 %v1866_v42 }
 0x6cb   :  { %v1555_v37 = vpop.f32.mrb[16].mxu1 }
 0x6cc   :  { %v1556_v1 = vpop.f32.mrb[17].mxu1 }
 0x6cd   :  { %v1557_v2 = vadd.f32 %v1556_v1, %v1555_v37 }
 0x6cf   :  { %v1102_v3 = vadd.f32 %v1557_v2, %v1363_v38 }
 0x6d1   :  { %v1105_v39 = vmax.f32 %v1102_v3, 0.0 }
 0x6d3   :  { %1659 = vmatmul.mubr.f32.vlgmr.msra.gmra.mrb[20].mxu0 %v1105_v39 }
 0x7a6   :  { %v1195_v19 = vpop.f32.mrb[20].mxu0 }
 0x7a7   :  { %v1196_v26 = vadd.f32 %v1364_v48, %v1195_v19  ;;  %v1660_v43 = vpop.f32.mrb[21].mxu0 }
 0x7a9   :  { %v1199_v44 = vmax.f32 %v1196_v26, 0.0 }
 0x7ab   :  { %1678 = vmatmul.mubr.msk.f32.vlgmr.msra.gmra.mrb[18].mxu1 %vm1215_vm9, %v1199_v44 }
 0x87e   :  { %v1285_v46 = vpop.f32.mrb[18].mxu1 }
 0x87f   :  { %v1286_v21 = vadd.f32 %v1365_v45, %v1285_v46  ;;  %v1679_v27 = vpop.f32.mrb[19].mxu1 }
 0x881   :  { %1290 = vst.msk [vmem:[%s2538_s15] sm:$0xff] %vm1289_vm10, %v1286_v21 }
 0x882   :  { %1295 = vsyncpa [#allocation8], 1 }
 0x883   :  { %1296 = vsyncpa [#allocation10], 1 }
 0x884   :  { %1297 = vsyncpa [#allocation13], 1 }

</bundles_post_ra>
